<compile_context>
chip_gen: v7x
topology: tpu7x:2x2x1
jax: 0.10.0
libtpu: 0.0.40
codegen_flags: <defaults>
</compile_context>

<pallas_src>
import functools

import jax
import jax.numpy as jnp
from jax.experimental import pallas as pl
from jax.experimental.pallas import tpu as pltpu

BN_EPS = 1e-5                   # PyTorch BatchNorm2d default eps
LANE = 128                      # lane width: pad output channels to this


def _tile_config():
    """Pick (M-tile target, VMEM limit) from the chip's VMEM capacity.
    128-MiB-VMEM parts (v5e/v6e) get bigger tiles; 64-MiB parts (v7x) keep 512."""
    tm_target, vmem_limit = 512, 32 * 1024 * 1024
    try:
        info = pltpu.get_tpu_info()
        if getattr(info, "vmem_capacity_bytes", 0) >= 100 * 1024 * 1024:
            tm_target, vmem_limit = 1024, 64 * 1024 * 1024
    except Exception:
        pass
    return tm_target, vmem_limit


_M_TILE_TARGET, _VMEM_LIMIT = _tile_config()


def _round_up(x, m):
    return (x + m - 1) // m * m


def _choose_m_tile(m, target=None):
    """Return (tile_m, padded_m). Prefer tile_m | round_up(m, 8) (no wasted
    padded tile); fall back to padding M up only if the best divisor tile is
    tiny (per-grid-step overhead)."""
    target = _M_TILE_TARGET if target is None else target
    m8 = _round_up(m, 8)
    units = m8 // 8
    best = 1
    for d in range(1, min(units, target // 8) + 1):
        if units % d == 0:
            best = d
    tm = 8 * best
    if tm >= 64 or tm == m8:
        return tm, m8
    tm = min(target, m8)
    return tm, _round_up(m8, tm)


def _pad_vec(v, cpad):
    v = jnp.asarray(v, jnp.float32).reshape(1, -1)
    return jnp.pad(v, ((0, 0), (0, cpad - v.shape[1])))


def _fold_scale_shift(col_sum, col_sq, gamma_pad, beta_pad, inv_m):
    """Fold BN(batch stats) into one per-channel scale + shift (plain JAX on
    (1, Cpad) vectors — hoisted out of the normalize kernel)."""
    mean = col_sum * inv_m
    var = col_sq * inv_m - mean * mean        # biased variance
    scale = gamma_pad * jax.lax.rsqrt(var + BN_EPS)
    shift = beta_pad - mean * scale
    return scale, shift


# ----------------------------- Pallas kernels ------------------------------ #

def matmul_stats_kernel(a_ref, w_ref, y_ref, sum_ref, sq_ref):
    """y_tile = a_tile @ w on the MXU (bf16 inputs, f32 accumulation).
    Emits bf16 y plus per-tile partial per-channel sum / sum-of-squares
    (computed from the f32 result before the bf16 cast)."""
    y = jnp.dot(a_ref[...], w_ref[...], preferred_element_type=jnp.float32)
    y_ref[...] = y.astype(y_ref.dtype)
    sum_ref[...] = jnp.sum(y, axis=0, keepdims=True).reshape(sum_ref.shape)
    sq_ref[...] = jnp.sum(y * y, axis=0, keepdims=True).reshape(sq_ref.shape)


def sc_stats_kernel(a_ref, w_ref, sum_ref, sq_ref):
    """Stats-only 1x1-shortcut matmul: no y written back to HBM (the matmul is
    recomputed in the fused normalize pass)."""
    y = jnp.dot(a_ref[...], w_ref[...], preferred_element_type=jnp.float32)
    sum_ref[...] = jnp.sum(y, axis=0, keepdims=True).reshape(sum_ref.shape)
    sq_ref[...] = jnp.sum(y * y, axis=0, keepdims=True).reshape(sq_ref.shape)


def bn_norm_kernel(*refs, apply_relu, residual):
    """Normalize pass: out = y*scale + shift, optionally fused with the
    shortcut branch (identity bf16 residual, or in-kernel 1x1 conv + BN) and
    the final ReLU."""
    if residual == "none":
        y_ref, scale_ref, shift_ref, o_ref = refs
    elif residual == "identity":
        y_ref, scale_ref, shift_ref, r_ref, o_ref = refs
    else:  # residual == "conv_bn"
        (y_ref, scale_ref, shift_ref, sc_ref, wsc_ref,
         rscale_ref, rshift_ref, o_ref) = refs

    out = y_ref[...].astype(jnp.float32) * scale_ref[...] + shift_ref[...]

    if residual == "identity":
        out = out + r_ref[...].astype(jnp.float32)
    elif residual == "conv_bn":
        # 1x1 shortcut conv recomputed here: rides the otherwise-idle MXU and
        # replaces a full (Mpad, Cpad) f32 HBM round trip with a (TM, Cin) bf16 read.
        ysc = jnp.dot(sc_ref[...], wsc_ref[...],
                      preferred_element_type=jnp.float32)
        out = out + ysc * rscale_ref[...] + rshift_ref[...]

    if apply_relu:
        out = jnp.maximum(out, 0.0)
    o_ref[...] = out.astype(o_ref.dtype)


# ------------------------------ kernel wrappers ----------------------------- #

def conv_matmul_stats(patches_bf16, weight, tm, mpad):
    """patches_bf16: (M, K) bf16, weight: (K, C) f32.  Tiled bf16 matmul with
    per-tile BN stat partials.  Returns y (Mpad, Cpad) bf16 and reduced
    per-channel (sum, sumsq), each (1, Cpad) f32.  Cpad is lane-dense."""
    M, K = patches_bf16.shape
    _, C = weight.shape
    Cpad = _round_up(C, LANE)
    nM = mpad // tm

    a = patches_bf16
    if mpad != M:
        a = jnp.pad(a, ((0, mpad - M), (0, 0)))
    w = jnp.pad(weight.astype(jnp.bfloat16), ((0, 0), (0, Cpad - C)))

    stat_spec = pl.BlockSpec((1, 1, Cpad), lambda i: (i, 0, 0))
    stat_shape = jax.ShapeDtypeStruct((nM, 1, Cpad), jnp.float32)

    y, psum, psq = pl.pallas_call(
        matmul_stats_kernel,
        grid=(nM,),
        in_specs=[pl.BlockSpec((tm, K), lambda i: (i, 0)),
                  # TODO(synk): on v7x, pipeline_mode=pl.Buffered(1) here would
                  # reclaim the redundant weight double-buffer.
                  pl.BlockSpec((K, Cpad), lambda i: (0, 0))],
        out_specs=(pl.BlockSpec((tm, Cpad), lambda i: (i, 0)),
                   stat_spec, stat_spec),
        out_shape=(jax.ShapeDtypeStruct((mpad, Cpad), jnp.bfloat16),
                   stat_shape, stat_shape),
        compiler_params=pltpu.CompilerParams(
            dimension_semantics=("parallel",),   # per-tile stats -> fully parallel
            vmem_limit_bytes=_VMEM_LIMIT),
    )(a, w)
    return y, jnp.sum(psum, axis=0), jnp.sum(psq, axis=0)


def shortcut_stats(sc_in_pad, wsc_pad, tm, mpad):
    """Stats-only pass for the 1x1 shortcut conv (no y output)."""
    nM = mpad // tm
    Cin = sc_in_pad.shape[1]
    Cpad = wsc_pad.shape[1]

    stat_spec = pl.BlockSpec((1, 1, Cpad), lambda i: (i, 0, 0))
    stat_shape = jax.ShapeDtypeStruct((nM, 1, Cpad), jnp.float32)

    psum, psq = pl.pallas_call(
        sc_stats_kernel,
        grid=(nM,),
        in_specs=[pl.BlockSpec((tm, Cin), lambda i: (i, 0)),
                  pl.BlockSpec((Cin, Cpad), lambda i: (0, 0))],
        out_specs=(stat_spec, stat_spec),
        out_shape=(stat_shape, stat_shape),
        compiler_params=pltpu.CompilerParams(
            dimension_semantics=("parallel",),
            vmem_limit_bytes=_VMEM_LIMIT),
    )(sc_in_pad, wsc_pad)
    return jnp.sum(psum, axis=0), jnp.sum(psq, axis=0)


def bn_normalize(y, scale, shift, tm, *, apply_relu, out_dtype,
                 residual_mode="none", residual=None,
                 sc_in=None, wsc=None, rscale=None, rshift=None):
    """Tiled BN normalize (+ optional fused residual / 1x1-conv-BN residual +
    ReLU).  scale/shift (and rscale/rshift) are precomputed (1, Cpad) f32."""
    Mpad, Cpad = y.shape
    assert Mpad % tm == 0
    nM = Mpad // tm

    row_spec = pl.BlockSpec((tm, Cpad), lambda i: (i, 0))
    vec_spec = pl.BlockSpec((1, Cpad), lambda i: (0, 0))

    if residual_mode == "none":
        args = (y, scale, shift)
        in_specs = [row_spec, vec_spec, vec_spec]
    elif residual_mode == "identity":
        args = (y, scale, shift, residual)
        in_specs = [row_spec, vec_spec, vec_spec, row_spec]
    else:  # "conv_bn"
        Cin = sc_in.shape[1]
        args = (y, scale, shift, sc_in, wsc, rscale, rshift)
        in_specs = [row_spec, vec_spec, vec_spec,
                    pl.BlockSpec((tm, Cin), lambda i: (i, 0)),
                    pl.BlockSpec((Cin, Cpad), lambda i: (0, 0)),
                    vec_spec, vec_spec]

    return pl.pallas_call(
        functools.partial(bn_norm_kernel, apply_relu=apply_relu,
                          residual=residual_mode),
        grid=(nM,),
        in_specs=in_specs,
        out_specs=row_spec,
        out_shape=jax.ShapeDtypeStruct((Mpad, Cpad), out_dtype),
        compiler_params=pltpu.CompilerParams(
            dimension_semantics=("parallel",),
            vmem_limit_bytes=_VMEM_LIMIT),
    )(*args)


# ------------------------------- JAX glue ----------------------------------- #

def im2col3x3(x, stride):
    """x: (N, H, W, C) -> patches (N*Ho*Wo, 9*C), feature order (kh, kw, cin).
    Keeps the input dtype (pass bf16 in to keep the 9x intermediate in bf16)."""
    N, H, W, C = x.shape
    xp = jnp.pad(x, ((0, 0), (1, 1), (1, 1), (0, 0)))
    Ho = (H + 2 - 3) // stride + 1
    Wo = (W + 2 - 3) // stride + 1
    cols = []
    for kh in range(3):
        for kw in range(3):
            cols.append(
                xp[:, kh:kh + (Ho - 1) * stride + 1:stride,
                   kw:kw + (Wo - 1) * stride + 1:stride, :])
    patches = jnp.concatenate(cols, axis=-1)          # (N, Ho, Wo, 9*C)
    return patches.reshape(N * Ho * Wo, 9 * C), (N, Ho, Wo)


def basic_block_forward(x_nhwc, params, *, stride):
    """Equivalent of BasicBlock.forward. Input/output layout: NHWC."""
    N, H, W, Cin = x_nhwc.shape
    planes = params['w1'].shape[-1]
    Cpad = _round_up(planes, LANE)

    x_bf16 = x_nhwc.astype(jnp.bfloat16)   # bf16 before im2col (halves patches bytes)

    # conv1 (3x3, stride, pad=1, no bias) -> bn1 (batch stats) -> relu
    p1, (N, Ho, Wo) = im2col3x3(x_bf16, stride)
    M = N * Ho * Wo
    inv_m = 1.0 / float(M)
    tm, mpad = _choose_m_tile(M)

    y1, s1, sq1 = conv_matmul_stats(p1, params['w1'].reshape(9 * Cin, planes),
                                    tm, mpad)
    scale1, shift1 = _fold_scale_shift(
        s1, sq1, _pad_vec(params['g1'], Cpad), _pad_vec(params['b1'], Cpad), inv_m)
    out1 = bn_normalize(y1, scale1, shift1, tm, apply_relu=True,
                        out_dtype=jnp.bfloat16)
    out1 = out1[:M, :planes].reshape(N, Ho, Wo, planes)   # bf16 intermediate

    # conv2 (3x3, stride=1, pad=1, no bias) -> bn2 (fused with shortcut below)
    p2, _ = im2col3x3(out1, 1)
    y2, s2, sq2 = conv_matmul_stats(p2, params['w2'].reshape(9 * planes, planes),
                                    tm, mpad)
    scale2, shift2 = _fold_scale_shift(
        s2, sq2, _pad_vec(params['g2'], Cpad), _pad_vec(params['b2'], Cpad), inv_m)

    # shortcut + residual add + relu, fused into the conv2 normalize pass
    if stride != 1 or Cin != planes:
        sc_in = x_bf16[:, ::stride, ::stride, :].reshape(M, Cin)
        if mpad != M:
            sc_in = jnp.pad(sc_in, ((0, mpad - M), (0, 0)))
        wsc = jnp.pad(params['wsc'].astype(jnp.bfloat16),
                      ((0, 0), (0, Cpad - planes)))
        ssc, sqsc = shortcut_stats(sc_in, wsc, tm, mpad)
        rscale, rshift = _fold_scale_shift(
            ssc, sqsc, _pad_vec(params['gsc'], Cpad),
            _pad_vec(params['bsc'], Cpad), inv_m)
        out = bn_normalize(y2, scale2, shift2, tm, apply_relu=True,
                           out_dtype=jnp.float32, residual_mode="conv_bn",
                           sc_in=sc_in, wsc=wsc, rscale=rscale, rshift=rshift)
    else:
        res = x_bf16.reshape(M, Cin)                    # bf16 identity residual
        res = jnp.pad(res, ((0, mpad - M), (0, Cpad - Cin)))
        out = bn_normalize(y2, scale2, shift2, tm, apply_relu=True,
                           out_dtype=jnp.float32, residual_mode="identity",
                           residual=res)

    return out[:M, :planes].reshape(N, Ho, Wo, planes)


# --------------------------- pure-JAX reference ------------------------------ #

def _bn_ref(y, g, b):
    mean = jnp.mean(y, axis=(0, 1, 2), keepdims=True)
    var = jnp.mean(jnp.square(y - mean), axis=(0, 1, 2), keepdims=True)
    return (y - mean) * jax.lax.rsqrt(var + BN_EPS) * g + b


def _conv_ref(x, w, stride, pad):
    # bf16 operands + f32 accumulation, matching the Pallas matmul precision
    return jax.lax.conv_general_dilated(
        x.astype(jnp.bfloat16), w.astype(jnp.bfloat16), (stride, stride), pad,
        dimension_numbers=('NHWC', 'HWIO', 'NHWC'),
        preferred_element_type=jnp.float32)


def ref_forward(x, params, stride):
    Cin = x.shape[-1]
    planes = params['w1'].shape[-1]
    y1 = _conv_ref(x, params['w1'], stride, ((1, 1), (1, 1)))
    out1 = jnp.maximum(_bn_ref(y1, params['g1'], params['b1']), 0.0)
    out1 = out1.astype(jnp.bfloat16).astype(jnp.float32)  # bf16 intermediate
    y2 = _conv_ref(out1, params['w2'], 1, ((1, 1), (1, 1)))
    y2 = _bn_ref(y2, params['g2'], params['b2'])
    if stride != 1 or Cin != planes:
        wsc = params['wsc'].reshape(1, 1, Cin, planes)
        ysc = _conv_ref(x, wsc, stride, ((0, 0), (0, 0)))
        ysc = _bn_ref(ysc, params['gsc'], params['bsc'])
    else:
        ysc = x
    return jnp.maximum(y2 + ysc, 0.0)


# ---------------------------------- main ------------------------------------ #

if __name__ == "__main__":
    def make_params(key, cin, planes, downsample):
        ks = jax.random.split(key, 9)
        p = {
            'w1': 0.1 * jax.random.normal(ks[0], (3, 3, cin, planes), jnp.float32),
            'g1': 1.0 + 0.1 * jax.random.normal(ks[1], (planes,), jnp.float32),
            'b1': 0.1 * jax.random.normal(ks[2], (planes,), jnp.float32),
            'w2': 0.1 * jax.random.normal(ks[3], (3, 3, planes, planes), jnp.float32),
            'g2': 1.0 + 0.1 * jax.random.normal(ks[4], (planes,), jnp.float32),
            'b2': 0.1 * jax.random.normal(ks[5], (planes,), jnp.float32),
        }
        if downsample:
            p['wsc'] = 0.1 * jax.random.normal(ks[6], (cin, planes), jnp.float32)
            p['gsc'] = 1.0 + 0.1 * jax.random.normal(ks[7], (planes,), jnp.float32)
            p['bsc'] = 0.1 * jax.random.normal(ks[8], (planes,), jnp.float32)
        return p

    key = jax.random.PRNGKey(0)
    configs = [
        # (N, Cin, H, W, planes, stride)
        (2, 4, 16, 16, 8, 2),    # downsample shortcut (1x1 conv + BN)
        (2, 8, 16, 16, 8, 1),    # identity shortcut
    ]
    for (N, Cin, H, W, planes, stride) in configs:
        key, pkey, xkey = jax.random.split(key, 3)
        downsample = (stride != 1 or Cin != planes)
        params = make_params(pkey, Cin, planes, downsample)

        x_nchw = jax.random.normal(xkey, (N, Cin, H, W), jnp.float32)
        x_nhwc = jnp.transpose(x_nchw, (0, 2, 3, 1))  # NCHW -> NHWC at the boundary

        fwd = jax.jit(functools.partial(basic_block_forward, stride=stride))
        out = jax.block_until_ready(fwd(x_nhwc, params))

        ref = ref_forward(x_nhwc, params, stride)
        assert out.shape == ref.shape, (out.shape, ref.shape)
        max_err = float(jnp.max(jnp.abs(out - ref)))
        # Tolerance reflects bf16 matmul operands + bf16 y/residual intermediates.
        assert jnp.allclose(out, ref, rtol=3e-2, atol=3e-2), (
            f"config={(N, Cin, H, W, planes, stride)} max_err={max_err}")

    print("KERNEL_OK")
</pallas_src>

<mosaic_0001>
module attributes {stable_mosaic.version = 11 : i64} {
  func.func @sc_stats_kernel(%arg0: i32, %arg1: memref<128x4xbf16, #tpu.memory_space<vmem>>, %arg2: memref<4x128xbf16, #tpu.memory_space<vmem>>, %arg3: memref<1x1x128xf32, #tpu.memory_space<vmem>>, %arg4: memref<1x1x128xf32, #tpu.memory_space<vmem>>) attributes {dimension_semantics = [#tpu.dimension_semantics<parallel>], iteration_bounds = array<i64: 1>, scalar_prefetch = 0 : i64, scratch_operands = 0 : i64, tpu.core_type = #tpu.core_type<tc>, window_params = [{transform_indices = @transform_0, window_bounds = array<i64: 128, 4>}, {pipeline_mode = #tpu.pipeline_mode<synchronous>, transform_indices = @transform_1, window_bounds = array<i64: 4, 128>}, {transform_indices = @transform_2, window_bounds = array<i64: 1, 1, 128>}, {transform_indices = @transform_3, window_bounds = array<i64: 1, 1, 128>}]} {
    %c0 = arith.constant 0 : index
    %c0_0 = arith.constant 0 : index
    %0 = vector.load %arg1[%c0, %c0_0] : memref<128x4xbf16, #tpu.memory_space<vmem>>, vector<128x4xbf16>
    %c0_1 = arith.constant 0 : index
    %c0_2 = arith.constant 0 : index
    %1 = vector.load %arg2[%c0_1, %c0_2] : memref<4x128xbf16, #tpu.memory_space<vmem>>, vector<4x128xbf16>
    %cst = arith.constant dense<0.000000e+00> : vector<128x128xf32>
    %2 = tpu.matmul %0, %1, %cst {dimension_numbers = #tpu.dot_dimension_numbers<[1], [0], [0], [1], [0, 0, 1, 1], [], []>} : vector<128x4xbf16>, vector<4x128xbf16>, vector<128x128xf32> -> vector<128x128xf32>
    %cst_3 = arith.constant dense<0.000000e+00> : vector<128xf32>
    %3 = vector.multi_reduction <add>, %2, %cst_3 [0] : vector<128x128xf32> to vector<128xf32>
    %4 = vector.shape_cast %3 : vector<128xf32> to vector<1x128xf32>
    %5 = vector.shape_cast %4 : vector<1x128xf32> to vector<1x1x128xf32>
    %c0_4 = arith.constant 0 : index
    %c0_5 = arith.constant 0 : index
    %c0_6 = arith.constant 0 : index
    %6 = vector.load %arg3[%c0_4, %c0_5, %c0_6] : memref<1x1x128xf32, #tpu.memory_space<vmem>>, vector<1x1x128xf32>
    tpu.vector_store %arg3[%c0_4, %c0_5, %c0_6], %5 {strides = array<i32>} : memref<1x1x128xf32, #tpu.memory_space<vmem>>, vector<1x1x128xf32>,
    %7 = arith.mulf %2, %2 : vector<128x128xf32>
    %cst_7 = arith.constant dense<0.000000e+00> : vector<128xf32>
    %8 = vector.multi_reduction <add>, %7, %cst_7 [0] : vector<128x128xf32> to vector<128xf32>
    %9 = vector.shape_cast %8 : vector<128xf32> to vector<1x128xf32>
    %10 = vector.shape_cast %9 : vector<1x128xf32> to vector<1x1x128xf32>
    %c0_8 = arith.constant 0 : index
    %c0_9 = arith.constant 0 : index
    %c0_10 = arith.constant 0 : index
    %11 = vector.load %arg4[%c0_8, %c0_9, %c0_10] : memref<1x1x128xf32, #tpu.memory_space<vmem>>, vector<1x1x128xf32>
    tpu.vector_store %arg4[%c0_8, %c0_9, %c0_10], %10 {strides = array<i32>} : memref<1x1x128xf32, #tpu.memory_space<vmem>>, vector<1x1x128xf32>,
    return
  }
  func.func @transform_0(%arg0: i32) -> (i32, i32) {
    %c0_i32 = arith.constant 0 : i32
    %c0_i32_0 = arith.constant 0 : i32
    return %arg0, %c0_i32 : i32, i32
  }
  func.func @transform_1(%arg0: i32) -> (i32, i32) {
    %c0_i32 = arith.constant 0 : i32
    %c0_i32_0 = arith.constant 0 : i32
    %c0_i32_1 = arith.constant 0 : i32
    return %c0_i32, %c0_i32_0 : i32, i32
  }
  func.func @transform_2(%arg0: i32) -> (i32, i32, i32) {
    %c0_i32 = arith.constant 0 : i32
    %c0_i32_0 = arith.constant 0 : i32
    %c0_i32_1 = arith.constant 0 : i32
    return %arg0, %c0_i32, %c0_i32_0 : i32, i32, i32
  }
  func.func @transform_3(%arg0: i32) -> (i32, i32, i32) {
    %c0_i32 = arith.constant 0 : i32
    %c0_i32_0 = arith.constant 0 : i32
    %c0_i32_1 = arith.constant 0 : i32
    return %arg0, %c0_i32, %c0_i32_0 : i32, i32, i32
  }
}

module attributes {stable_mosaic.version = 11 : i64} {
  func.func @matmul_stats_kernel(%arg0: i32, %arg1: memref<128x36xbf16, #tpu.memory_space<vmem>>, %arg2: memref<36x128xbf16, #tpu.memory_space<vmem>>, %arg3: memref<128x128xbf16, #tpu.memory_space<vmem>>, %arg4: memref<1x1x128xf32, #tpu.memory_space<vmem>>, %arg5: memref<1x1x128xf32, #tpu.memory_space<vmem>>) attributes {dimension_semantics = [#tpu.dimension_semantics<parallel>], iteration_bounds = array<i64: 1>, scalar_prefetch = 0 : i64, scratch_operands = 0 : i64, tpu.core_type = #tpu.core_type<tc>, window_params = [{transform_indices = @transform_0, window_bounds = array<i64: 128, 36>}, {pipeline_mode = #tpu.pipeline_mode<synchronous>, transform_indices = @transform_1, window_bounds = array<i64: 36, 128>}, {transform_indices = @transform_2, window_bounds = array<i64: 128, 128>}, {transform_indices = @transform_3, window_bounds = array<i64: 1, 1, 128>}, {transform_indices = @transform_4, window_bounds = array<i64: 1, 1, 128>}]} {
    %c0 = arith.constant 0 : index
    %c0_0 = arith.constant 0 : index
    %0 = vector.load %arg1[%c0, %c0_0] : memref<128x36xbf16, #tpu.memory_space<vmem>>, vector<128x36xbf16>
    %c0_1 = arith.constant 0 : index
    %c0_2 = arith.constant 0 : index
    %1 = vector.load %arg2[%c0_1, %c0_2] : memref<36x128xbf16, #tpu.memory_space<vmem>>, vector<36x128xbf16>
    %cst = arith.constant dense<0.000000e+00> : vector<128x128xf32>
    %2 = tpu.matmul %0, %1, %cst {dimension_numbers = #tpu.dot_dimension_numbers<[1], [0], [0], [1], [0, 0, 1, 1], [], []>} : vector<128x36xbf16>, vector<36x128xbf16>, vector<128x128xf32> -> vector<128x128xf32>
    %3 = arith.truncf %2 : vector<128x128xf32> to vector<128x128xbf16>
    %c0_3 = arith.constant 0 : index
    %c0_4 = arith.constant 0 : index
    %4 = vector.load %arg3[%c0_3, %c0_4] : memref<128x128xbf16, #tpu.memory_space<vmem>>, vector<128x128xbf16>
    tpu.vector_store %arg3[%c0_3, %c0_4], %3 {strides = array<i32>} : memref<128x128xbf16, #tpu.memory_space<vmem>>, vector<128x128xbf16>,
    %cst_5 = arith.constant dense<0.000000e+00> : vector<128xf32>
    %5 = vector.multi_reduction <add>, %2, %cst_5 [0] : vector<128x128xf32> to vector<128xf32>
    %6 = vector.shape_cast %5 : vector<128xf32> to vector<1x128xf32>
    %7 = vector.shape_cast %6 : vector<1x128xf32> to vector<1x1x128xf32>
    %c0_6 = arith.constant 0 : index
    %c0_7 = arith.constant 0 : index
    %c0_8 = arith.constant 0 : index
    %8 = vector.load %arg4[%c0_6, %c0_7, %c0_8] : memref<1x1x128xf32, #tpu.memory_space<vmem>>, vector<1x1x128xf32>
    tpu.vector_store %arg4[%c0_6, %c0_7, %c0_8], %7 {strides = array<i32>} : memref<1x1x128xf32, #tpu.memory_space<vmem>>, vector<1x1x128xf32>,
    %9 = arith.mulf %2, %2 : vector<128x128xf32>
    %cst_9 = arith.constant dense<0.000000e+00> : vector<128xf32>
    %10 = vector.multi_reduction <add>, %9, %cst_9 [0] : vector<128x128xf32> to vector<128xf32>
    %11 = vector.shape_cast %10 : vector<128xf32> to vector<1x128xf32>
    %12 = vector.shape_cast %11 : vector<1x128xf32> to vector<1x1x128xf32>
    %c0_10 = arith.constant 0 : index
    %c0_11 = arith.constant 0 : index
    %c0_12 = arith.constant 0 : index
    %13 = vector.load %arg5[%c0_10, %c0_11, %c0_12] : memref<1x1x128xf32, #tpu.memory_space<vmem>>, vector<1x1x128xf32>
    tpu.vector_store %arg5[%c0_10, %c0_11, %c0_12], %12 {strides = array<i32>} : memref<1x1x128xf32, #tpu.memory_space<vmem>>, vector<1x1x128xf32>,
    return
  }
  func.func @transform_0(%arg0: i32) -> (i32, i32) {
    %c0_i32 = arith.constant 0 : i32
    %c0_i32_0 = arith.constant 0 : i32
    return %arg0, %c0_i32 : i32, i32
  }
  func.func @transform_1(%arg0: i32) -> (i32, i32) {
    %c0_i32 = arith.constant 0 : i32
    %c0_i32_0 = arith.constant 0 : i32
    %c0_i32_1 = arith.constant 0 : i32
    return %c0_i32, %c0_i32_0 : i32, i32
  }
  func.func @transform_2(%arg0: i32) -> (i32, i32) {
    %c0_i32 = arith.constant 0 : i32
    %c0_i32_0 = arith.constant 0 : i32
    return %arg0, %c0_i32 : i32, i32
  }
  func.func @transform_3(%arg0: i32) -> (i32, i32, i32) {
    %c0_i32 = arith.constant 0 : i32
    %c0_i32_0 = arith.constant 0 : i32
    %c0_i32_1 = arith.constant 0 : i32
    return %arg0, %c0_i32, %c0_i32_0 : i32, i32, i32
  }
  func.func @transform_4(%arg0: i32) -> (i32, i32, i32) {
    %c0_i32 = arith.constant 0 : i32
    %c0_i32_0 = arith.constant 0 : i32
    %c0_i32_1 = arith.constant 0 : i32
    return %arg0, %c0_i32, %c0_i32_0 : i32, i32, i32
  }
}

module attributes {stable_mosaic.version = 11 : i64} {
  func.func @bn_norm_kernel(%arg0: i32, %arg1: memref<128x128xbf16, #tpu.memory_space<vmem>>, %arg2: memref<1x128xf32, #tpu.memory_space<vmem>>, %arg3: memref<1x128xf32, #tpu.memory_space<vmem>>, %arg4: memref<128x128xbf16, #tpu.memory_space<vmem>>) attributes {dimension_semantics = [#tpu.dimension_semantics<parallel>], iteration_bounds = array<i64: 1>, scalar_prefetch = 0 : i64, scratch_operands = 0 : i64, tpu.core_type = #tpu.core_type<tc>, window_params = [{transform_indices = @transform_0, window_bounds = array<i64: 128, 128>}, {pipeline_mode = #tpu.pipeline_mode<synchronous>, transform_indices = @transform_1, window_bounds = array<i64: 1, 128>}, {pipeline_mode = #tpu.pipeline_mode<synchronous>, transform_indices = @transform_2, window_bounds = array<i64: 1, 128>}, {transform_indices = @transform_3, window_bounds = array<i64: 128, 128>}]} {
    %c0 = arith.constant 0 : index
    %c0_0 = arith.constant 0 : index
    %0 = vector.load %arg1[%c0, %c0_0] : memref<128x128xbf16, #tpu.memory_space<vmem>>, vector<128x128xbf16>
    %1 = arith.extf %0 : vector<128x128xbf16> to vector<128x128xf32>
    %c0_1 = arith.constant 0 : index
    %c0_2 = arith.constant 0 : index
    %2 = vector.load %arg2[%c0_1, %c0_2] : memref<1x128xf32, #tpu.memory_space<vmem>>, vector<1x128xf32>
    %3 = vector.broadcast %2 : vector<1x128xf32> to vector<128x128xf32>
    %4 = arith.mulf %1, %3 : vector<128x128xf32>
    %c0_3 = arith.constant 0 : index
    %c0_4 = arith.constant 0 : index
    %5 = vector.load %arg3[%c0_3, %c0_4] : memref<1x128xf32, #tpu.memory_space<vmem>>, vector<1x128xf32>
    %6 = vector.broadcast %5 : vector<1x128xf32> to vector<128x128xf32>
    %7 = arith.addf %4, %6 : vector<128x128xf32>
    %cst = arith.constant 0.000000e+00 : f32
    %8 = vector.broadcast %cst : f32 to vector<128x128xf32>
    %9 = arith.maximumf %7, %8 : vector<128x128xf32>
    %10 = arith.truncf %9 : vector<128x128xf32> to vector<128x128xbf16>
    %c0_5 = arith.constant 0 : index
    %c0_6 = arith.constant 0 : index
    %11 = vector.load %arg4[%c0_5, %c0_6] : memref<128x128xbf16, #tpu.memory_space<vmem>>, vector<128x128xbf16>
    tpu.vector_store %arg4[%c0_5, %c0_6], %10 {strides = array<i32>} : memref<128x128xbf16, #tpu.memory_space<vmem>>, vector<128x128xbf16>,
    return
  }
  func.func @transform_0(%arg0: i32) -> (i32, i32) {
    %c0_i32 = arith.constant 0 : i32
    %c0_i32_0 = arith.constant 0 : i32
    return %arg0, %c0_i32 : i32, i32
  }
  func.func @transform_1(%arg0: i32) -> (i32, i32) {
    %c0_i32 = arith.constant 0 : i32
    %c0_i32_0 = arith.constant 0 : i32
    %c0_i32_1 = arith.constant 0 : i32
    return %c0_i32, %c0_i32_0 : i32, i32
  }
  func.func @transform_2(%arg0: i32) -> (i32, i32) {
    %c0_i32 = arith.constant 0 : i32
    %c0_i32_0 = arith.constant 0 : i32
    %c0_i32_1 = arith.constant 0 : i32
    return %c0_i32, %c0_i32_0 : i32, i32
  }
  func.func @transform_3(%arg0: i32) -> (i32, i32) {
    %c0_i32 = arith.constant 0 : i32
    %c0_i32_0 = arith.constant 0 : i32
    return %arg0, %c0_i32 : i32, i32
  }
}

module attributes {stable_mosaic.version = 11 : i64} {
  func.func @matmul_stats_kernel(%arg0: i32, %arg1: memref<128x72xbf16, #tpu.memory_space<vmem>>, %arg2: memref<72x128xbf16, #tpu.memory_space<vmem>>, %arg3: memref<128x128xbf16, #tpu.memory_space<vmem>>, %arg4: memref<1x1x128xf32, #tpu.memory_space<vmem>>, %arg5: memref<1x1x128xf32, #tpu.memory_space<vmem>>) attributes {dimension_semantics = [#tpu.dimension_semantics<parallel>], iteration_bounds = array<i64: 1>, scalar_prefetch = 0 : i64, scratch_operands = 0 : i64, tpu.core_type = #tpu.core_type<tc>, window_params = [{transform_indices = @transform_0, window_bounds = array<i64: 128, 72>}, {pipeline_mode = #tpu.pipeline_mode<synchronous>, transform_indices = @transform_1, window_bounds = array<i64: 72, 128>}, {transform_indices = @transform_2, window_bounds = array<i64: 128, 128>}, {transform_indices = @transform_3, window_bounds = array<i64: 1, 1, 128>}, {transform_indices = @transform_4, window_bounds = array<i64: 1, 1, 128>}]} {
    %c0 = arith.constant 0 : index
    %c0_0 = arith.constant 0 : index
    %0 = vector.load %arg1[%c0, %c0_0] : memref<128x72xbf16, #tpu.memory_space<vmem>>, vector<128x72xbf16>
    %c0_1 = arith.constant 0 : index
    %c0_2 = arith.constant 0 : index
    %1 = vector.load %arg2[%c0_1, %c0_2] : memref<72x128xbf16, #tpu.memory_space<vmem>>, vector<72x128xbf16>
    %cst = arith.constant dense<0.000000e+00> : vector<128x128xf32>
    %2 = tpu.matmul %0, %1, %cst {dimension_numbers = #tpu.dot_dimension_numbers<[1], [0], [0], [1], [0, 0, 1, 1], [], []>} : vector<128x72xbf16>, vector<72x128xbf16>, vector<128x128xf32> -> vector<128x128xf32>
    %3 = arith.truncf %2 : vector<128x128xf32> to vector<128x128xbf16>
    %c0_3 = arith.constant 0 : index
    %c0_4 = arith.constant 0 : index
    %4 = vector.load %arg3[%c0_3, %c0_4] : memref<128x128xbf16, #tpu.memory_space<vmem>>, vector<128x128xbf16>
    tpu.vector_store %arg3[%c0_3, %c0_4], %3 {strides = array<i32>} : memref<128x128xbf16, #tpu.memory_space<vmem>>, vector<128x128xbf16>,
    %cst_5 = arith.constant dense<0.000000e+00> : vector<128xf32>
    %5 = vector.multi_reduction <add>, %2, %cst_5 [0] : vector<128x128xf32> to vector<128xf32>
    %6 = vector.shape_cast %5 : vector<128xf32> to vector<1x128xf32>
    %7 = vector.shape_cast %6 : vector<1x128xf32> to vector<1x1x128xf32>
    %c0_6 = arith.constant 0 : index
    %c0_7 = arith.constant 0 : index
    %c0_8 = arith.constant 0 : index
    %8 = vector.load %arg4[%c0_6, %c0_7, %c0_8] : memref<1x1x128xf32, #tpu.memory_space<vmem>>, vector<1x1x128xf32>
    tpu.vector_store %arg4[%c0_6, %c0_7, %c0_8], %7 {strides = array<i32>} : memref<1x1x128xf32, #tpu.memory_space<vmem>>, vector<1x1x128xf32>,
    %9 = arith.mulf %2, %2 : vector<128x128xf32>
    %cst_9 = arith.constant dense<0.000000e+00> : vector<128xf32>
    %10 = vector.multi_reduction <add>, %9, %cst_9 [0] : vector<128x128xf32> to vector<128xf32>
    %11 = vector.shape_cast %10 : vector<128xf32> to vector<1x128xf32>
    %12 = vector.shape_cast %11 : vector<1x128xf32> to vector<1x1x128xf32>
    %c0_10 = arith.constant 0 : index
    %c0_11 = arith.constant 0 : index
    %c0_12 = arith.constant 0 : index
    %13 = vector.load %arg5[%c0_10, %c0_11, %c0_12] : memref<1x1x128xf32, #tpu.memory_space<vmem>>, vector<1x1x128xf32>
    tpu.vector_store %arg5[%c0_10, %c0_11, %c0_12], %12 {strides = array<i32>} : memref<1x1x128xf32, #tpu.memory_space<vmem>>, vector<1x1x128xf32>,
    return
  }
  func.func @transform_0(%arg0: i32) -> (i32, i32) {
    %c0_i32 = arith.constant 0 : i32
    %c0_i32_0 = arith.constant 0 : i32
    return %arg0, %c0_i32 : i32, i32
  }
  func.func @transform_1(%arg0: i32) -> (i32, i32) {
    %c0_i32 = arith.constant 0 : i32
    %c0_i32_0 = arith.constant 0 : i32
    %c0_i32_1 = arith.constant 0 : i32
    return %c0_i32, %c0_i32_0 : i32, i32
  }
  func.func @transform_2(%arg0: i32) -> (i32, i32) {
    %c0_i32 = arith.constant 0 : i32
    %c0_i32_0 = arith.constant 0 : i32
    return %arg0, %c0_i32 : i32, i32
  }
  func.func @transform_3(%arg0: i32) -> (i32, i32, i32) {
    %c0_i32 = arith.constant 0 : i32
    %c0_i32_0 = arith.constant 0 : i32
    %c0_i32_1 = arith.constant 0 : i32
    return %arg0, %c0_i32, %c0_i32_0 : i32, i32, i32
  }
  func.func @transform_4(%arg0: i32) -> (i32, i32, i32) {
    %c0_i32 = arith.constant 0 : i32
    %c0_i32_0 = arith.constant 0 : i32
    %c0_i32_1 = arith.constant 0 : i32
    return %arg0, %c0_i32, %c0_i32_0 : i32, i32, i32
  }
}

module attributes {stable_mosaic.version = 11 : i64} {
  func.func @bn_norm_kernel(%arg0: i32, %arg1: memref<128x128xbf16, #tpu.memory_space<vmem>>, %arg2: memref<1x128xf32, #tpu.memory_space<vmem>>, %arg3: memref<1x128xf32, #tpu.memory_space<vmem>>, %arg4: memref<128x4xbf16, #tpu.memory_space<vmem>>, %arg5: memref<4x128xbf16, #tpu.memory_space<vmem>>, %arg6: memref<1x128xf32, #tpu.memory_space<vmem>>, %arg7: memref<1x128xf32, #tpu.memory_space<vmem>>, %arg8: memref<128x128xf32, #tpu.memory_space<vmem>>) attributes {dimension_semantics = [#tpu.dimension_semantics<parallel>], iteration_bounds = array<i64: 1>, scalar_prefetch = 0 : i64, scratch_operands = 0 : i64, tpu.core_type = #tpu.core_type<tc>, window_params = [{transform_indices = @transform_0, window_bounds = array<i64: 128, 128>}, {pipeline_mode = #tpu.pipeline_mode<synchronous>, transform_indices = @transform_1, window_bounds = array<i64: 1, 128>}, {pipeline_mode = #tpu.pipeline_mode<synchronous>, transform_indices = @transform_2, window_bounds = array<i64: 1, 128>}, {transform_indices = @transform_3, window_bounds = array<i64: 128, 4>}, {pipeline_mode = #tpu.pipeline_mode<synchronous>, transform_indices = @transform_4, window_bounds = array<i64: 4, 128>}, {pipeline_mode = #tpu.pipeline_mode<synchronous>, transform_indices = @transform_5, window_bounds = array<i64: 1, 128>}, {pipeline_mode = #tpu.pipeline_mode<synchronous>, transform_indices = @transform_6, window_bounds = array<i64: 1, 128>}, {transform_indices = @transform_7, window_bounds = array<i64: 128, 128>}]} {
    %c0 = arith.constant 0 : index
    %c0_0 = arith.constant 0 : index
    %0 = vector.load %arg1[%c0, %c0_0] : memref<128x128xbf16, #tpu.memory_space<vmem>>, vector<128x128xbf16>
    %1 = arith.extf %0 : vector<128x128xbf16> to vector<128x128xf32>
    %c0_1 = arith.constant 0 : index
    %c0_2 = arith.constant 0 : index
    %2 = vector.load %arg2[%c0_1, %c0_2] : memref<1x128xf32, #tpu.memory_space<vmem>>, vector<1x128xf32>
    %3 = vector.broadcast %2 : vector<1x128xf32> to vector<128x128xf32>
    %4 = arith.mulf %1, %3 : vector<128x128xf32>
    %c0_3 = arith.constant 0 : index
    %c0_4 = arith.constant 0 : index
    %5 = vector.load %arg3[%c0_3, %c0_4] : memref<1x128xf32, #tpu.memory_space<vmem>>, vector<1x128xf32>
    %6 = vector.broadcast %5 : vector<1x128xf32> to vector<128x128xf32>
    %7 = arith.addf %4, %6 : vector<128x128xf32>
    %c0_5 = arith.constant 0 : index
    %c0_6 = arith.constant 0 : index
    %8 = vector.load %arg4[%c0_5, %c0_6] : memref<128x4xbf16, #tpu.memory_space<vmem>>, vector<128x4xbf16>
    %c0_7 = arith.constant 0 : index
    %c0_8 = arith.constant 0 : index
    %9 = vector.load %arg5[%c0_7, %c0_8] : memref<4x128xbf16, #tpu.memory_space<vmem>>, vector<4x128xbf16>
    %cst = arith.constant dense<0.000000e+00> : vector<128x128xf32>
    %10 = tpu.matmul %8, %9, %cst {dimension_numbers = #tpu.dot_dimension_numbers<[1], [0], [0], [1], [0, 0, 1, 1], [], []>} : vector<128x4xbf16>, vector<4x128xbf16>, vector<128x128xf32> -> vector<128x128xf32>
    %c0_9 = arith.constant 0 : index
    %c0_10 = arith.constant 0 : index
    %11 = vector.load %arg6[%c0_9, %c0_10] : memref<1x128xf32, #tpu.memory_space<vmem>>, vector<1x128xf32>
    %12 = vector.broadcast %11 : vector<1x128xf32> to vector<128x128xf32>
    %13 = arith.mulf %10, %12 : vector<128x128xf32>
    %14 = arith.addf %7, %13 : vector<128x128xf32>
    %c0_11 = arith.constant 0 : index
    %c0_12 = arith.constant 0 : index
    %15 = vector.load %arg7[%c0_11, %c0_12] : memref<1x128xf32, #tpu.memory_space<vmem>>, vector<1x128xf32>
    %16 = vector.broadcast %15 : vector<1x128xf32> to vector<128x128xf32>
    %17 = arith.addf %14, %16 : vector<128x128xf32>
    %cst_13 = arith.constant 0.000000e+00 : f32
    %18 = vector.broadcast %cst_13 : f32 to vector<128x128xf32>
    %19 = arith.maximumf %17, %18 : vector<128x128xf32>
    %c0_14 = arith.constant 0 : index
    %c0_15 = arith.constant 0 : index
    %20 = vector.load %arg8[%c0_14, %c0_15] : memref<128x128xf32, #tpu.memory_space<vmem>>, vector<128x128xf32>
    tpu.vector_store %arg8[%c0_14, %c0_15], %19 {strides = array<i32>} : memref<128x128xf32, #tpu.memory_space<vmem>>, vector<128x128xf32>,
    return
  }
  func.func @transform_0(%arg0: i32) -> (i32, i32) {
    %c0_i32 = arith.constant 0 : i32
    %c0_i32_0 = arith.constant 0 : i32
    return %arg0, %c0_i32 : i32, i32
  }
  func.func @transform_1(%arg0: i32) -> (i32, i32) {
    %c0_i32 = arith.constant 0 : i32
    %c0_i32_0 = arith.constant 0 : i32
    %c0_i32_1 = arith.constant 0 : i32
    return %c0_i32, %c0_i32_0 : i32, i32
  }
  func.func @transform_2(%arg0: i32) -> (i32, i32) {
    %c0_i32 = arith.constant 0 : i32
    %c0_i32_0 = arith.constant 0 : i32
    %c0_i32_1 = arith.constant 0 : i32
    return %c0_i32, %c0_i32_0 : i32, i32
  }
  func.func @transform_3(%arg0: i32) -> (i32, i32) {
    %c0_i32 = arith.constant 0 : i32
    %c0_i32_0 = arith.constant 0 : i32
    return %arg0, %c0_i32 : i32, i32
  }
  func.func @transform_4(%arg0: i32) -> (i32, i32) {
    %c0_i32 = arith.constant 0 : i32
    %c0_i32_0 = arith.constant 0 : i32
    %c0_i32_1 = arith.constant 0 : i32
    return %c0_i32, %c0_i32_0 : i32, i32
  }
  func.func @transform_5(%arg0: i32) -> (i32, i32) {
    %c0_i32 = arith.constant 0 : i32
    %c0_i32_0 = arith.constant 0 : i32
    %c0_i32_1 = arith.constant 0 : i32
    return %c0_i32, %c0_i32_0 : i32, i32
  }
  func.func @transform_6(%arg0: i32) -> (i32, i32) {
    %c0_i32 = arith.constant 0 : i32
    %c0_i32_0 = arith.constant 0 : i32
    %c0_i32_1 = arith.constant 0 : i32
    return %c0_i32, %c0_i32_0 : i32, i32
  }
  func.func @transform_7(%arg0: i32) -> (i32, i32) {
    %c0_i32 = arith.constant 0 : i32
    %c0_i32_0 = arith.constant 0 : i32
    return %arg0, %c0_i32 : i32, i32
  }
}

</mosaic_0001>

<bundles_post_ra>
// kernel: basic_block_forward.8
= control target key start
LH: loop header
LB: loop body
LE: loop exit
PB: predicated region body
PF: predicated region fallthrough
CT: control target
= control target key end

     0   :  { %vm96_vm0 = vcmask 1041408   ;;  %vm71_vm1 = vcmask 31744   ;;  %s381_s1 = inlined_call_operand.vmem [shape: bf16[4,128], index: 1, kind: input, shape index: {}]   ;;  %s382_s0 = inlined_call_operand.vmem [shape: bf16[128,4], index: 0, kind: input, shape index: {}]   ;;  %s383_s2 = inlined_call_operand.vmem [shape: f32[1,1,128], index: 2, kind: output, shape index: {0}]   ;;  %s384_s3 = inlined_call_operand.vmem [shape: f32[1,1,128], index: 3, kind: output, shape index: {1}]  }
   0x1   :  { %v30_v0 = vld [vmem:[%s381_s1] sm:$0x3]  ;;  %v313_v3 = vld [vmem:[%s382_s0 + $0x8] sm:$0xff]   ;;  %v314_v4 = vld [vmem:[%s382_s0 + $0x10] sm:$0xff]  }
   0x2   :  { %310 = vmatprep.subr.msk.bf16.mxu0 %vm96_vm0, %v30_v0  ;;  %v98_v1 = vsel %vm96_vm0, %v30_v0, 0  ;;  %v312_v2 = vld [vmem:[%s382_s0] sm:$0xff]   ;;  %311 = vmatprep.subr.msk.bf16.mxu1 %vm96_vm0, %v30_v0  ;;  %v317_v6 = vld [vmem:[%s382_s0 + $0x28] sm:$0xff]   ;;  %v318_v7 = vld [vmem:[%s382_s0 + $0x30] sm:$0xff]  }
   0x3   :  { %291 = vmatpush3.bf16.msra.mxu0 %v98_v1  ;;  %309 = vmatpush3.bf16.msra.mxu1 %v98_v1  ;;  %v316_v5 = vld [vmem:[%s382_s0 + $0x20] sm:$0xff]   ;;  %v315_v8 = vld [vmem:[%s382_s0 + $0x18] sm:$0xff]  }
   0x4   :  { %292 = vmatprep.mubr.msk.bf16.mxu0 %vm71_vm1, %v312_v2  ;;  %300 = vmatprep.mubr.msk.bf16.mxu1 %vm71_vm1, %v316_v5  ;;  %v319_v9 = vld [vmem:[%s382_s0 + $0x38] sm:$0xff]  }
   0x6   :  { %293 = vmatmul.mubr.msk.bf16.vlgmr.msra.gmra.mrb[0].mxu0 %vm71_vm1, %v313_v3  ;;  %301 = vmatmul.mubr.msk.bf16.vlgmr.msra.gmra.mrb[0].mxu1 %vm71_vm1, %v317_v6 }
   0x7   :  { %296 = vmatprep.mubr.msk.bf16.mxu0 %vm71_vm1, %v314_v4  ;;  %304 = vmatprep.mubr.msk.bf16.mxu1 %vm71_vm1, %v318_v7 }
   0xe   :  { %297 = vmatmul.mubr.msk.bf16.gmra.mrb[4].mxu0 %vm71_vm1, %v315_v8  ;;  %305 = vmatmul.mubr.msk.bf16.gmra.mrb[4].mxu1 %vm71_vm1, %v319_v9 }
  0xd9   :  { %v294_v10 = vpop.f32.mrb[0].mxu0  ;;  %v302_v14 = vpop.f32.mrb[0].mxu1 }
  0xda   :  { %v134_v11 = vpop.f32.mrb[1].mxu0  ;;  %v166_v18 = vpop.f32.mrb[1].mxu1  ;;  %v221_v20 = vmul.f32 %v294_v10, %v294_v10  ;;  %v229_v53 = vmul.f32 %v302_v14, %v302_v14 }
  0xdb   :  { %v295_v12 = vpop.f32.mrb[2].mxu0  ;;  %v219_v15 = vmul.f32 %v134_v11, %v134_v11  ;;  %v303_v19 = vpop.f32.mrb[2].mxu1  ;;  %v227_v47 = vmul.f32 %v166_v18, %v166_v18 }
  0xdc   :  { %v137_v13 = vpop.f32.mrb[3].mxu0  ;;  %v169_v23 = vpop.f32.mrb[3].mxu1  ;;  %v222_v24 = vmul.f32 %v295_v12, %v295_v12  ;;  %v230_v56 = vmul.f32 %v303_v19, %v303_v19 }
  0xdd   :  { %v197_v16 = vadd.f32 %v137_v13, %v134_v11  ;;  %v220_v17 = vmul.f32 %v137_v13, %v137_v13  ;;  %v228_v52 = vmul.f32 %v169_v23, %v169_v23 }
  0xdf   :  { %v198_v21 = vadd.f32 %v294_v10, %v197_v16  ;;  %v235_v22 = vadd.f32 %v220_v17, %v219_v15 }
  0xe1   :  { %v236_v25 = vadd.f32 %v235_v22, %v221_v20  ;;  %v298_v26 = vpop.f32.mrb[4].mxu0  ;;  %v199_v27 = vadd.f32 %v295_v12, %v198_v21  ;;  %v306_v34 = vpop.f32.mrb[4].mxu1 }
  0xe2   :  { %v150_v28 = vpop.f32.mrb[5].mxu0  ;;  %v182_v38 = vpop.f32.mrb[5].mxu1  ;;  %v225_v40 = vmul.f32 %v298_v26, %v298_v26  ;;  %v233_v1 = vmul.f32 %v306_v34, %v306_v34 }
  0xe3   :  { %v200_v29 = vadd.f32 %v199_v27, %v150_v28  ;;  %v223_v30 = vmul.f32 %v150_v28, %v150_v28  ;;  %v237_v31 = vadd.f32 %v236_v25, %v222_v24  ;;  %v299_v32 = vpop.f32.mrb[6].mxu0  ;;  %v307_v39 = vpop.f32.mrb[6].mxu1  ;;  %v231_v59 = vmul.f32 %v182_v38, %v182_v38 }
  0xe4   :  { %v153_v33 = vpop.f32.mrb[7].mxu0  ;;  %v185_v43 = vpop.f32.mrb[7].mxu1  ;;  %v226_v44 = vmul.f32 %v299_v32, %v299_v32  ;;  %v234_v4 = vmul.f32 %v307_v39, %v307_v39 }
  0xe5   :  { %v238_v35 = vadd.f32 %v237_v31, %v223_v30  ;;  %v201_v36 = vadd.f32 %v200_v29, %v153_v33  ;;  %v224_v37 = vmul.f32 %v153_v33, %v153_v33  ;;  %v232_v0 = vmul.f32 %v185_v43, %v185_v43 }
  0xe7   :  { %v202_v41 = vadd.f32 %v298_v26, %v201_v36  ;;  %v239_v42 = vadd.f32 %v238_v35, %v224_v37 }
  0xe9   :  { %v240_v45 = vadd.f32 %v239_v42, %v225_v40  ;;  %v203_v46 = vadd.f32 %v299_v32, %v202_v41 }
  0xeb   :  { %v204_v48 = vadd.f32 %v203_v46, %v166_v18  ;;  %v241_v49 = vadd.f32 %v240_v45, %v226_v44 }
  0xed   :  { %v242_v50 = vadd.f32 %v241_v49, %v227_v47  ;;  %v205_v51 = vadd.f32 %v204_v48, %v169_v23 }
  0xef   :  { %v206_v54 = vadd.f32 %v302_v14, %v205_v51  ;;  %v243_v55 = vadd.f32 %v242_v50, %v228_v52 }
  0xf1   :  { %v244_v57 = vadd.f32 %v243_v55, %v229_v53  ;;  %v207_v58 = vadd.f32 %v303_v19, %v206_v54 }
  0xf3   :  { %v208_v60 = vadd.f32 %v207_v58, %v182_v38  ;;  %v245_v61 = vadd.f32 %v244_v57, %v230_v56 }
  0xf5   :  { %v246_v62 = vadd.f32 %v245_v61, %v231_v59  ;;  %v209_v63 = vadd.f32 %v208_v60, %v185_v43 }
  0xf7   :  { %v210_v2 = vadd.f32 %v306_v34, %v209_v63  ;;  %v247_v3 = vadd.f32 %v246_v62, %v232_v0 }
  0xf9   :  { %v211_v5 = vadd.f32 %v307_v39, %v210_v2  ;;  %v248_v6 = vadd.f32 %v247_v3, %v233_v1 }
  0xfb   :  { %v212_v7 = vrot.slane %v211_v5, 4  ;;  %v249_v8 = vadd.f32 %v248_v6, %v234_v4 }
  0xfd   :  { %v213_v9 = vadd.f32 %v212_v7, %v211_v5  ;;  %v250_v10 = vrot.slane %v249_v8, 4 }
  0xff   :  { %v214_v11 = vrot.slane %v213_v9, 2  ;;  %v251_v12 = vadd.f32 %v250_v10, %v249_v8 }
 0x101   :  { %v215_v13 = vadd.f32 %v214_v11, %v213_v9  ;;  %v252_v14 = vrot.slane %v251_v12, 2 }
 0x103   :  { %v216_v15 = vrot.slane %v215_v13, 1  ;;  %v253_v16 = vadd.f32 %v252_v14, %v251_v12 }
 0x105   :  { %v217_v17 = vadd.f32 %v216_v15, %v215_v13  ;;  %v254_v18 = vrot.slane %v253_v16, 1 }
 0x107   :  { %218 = vst [vmem:[%s383_s2] sm:$0x1] %v217_v17  ;;  %v255_v19 = vadd.f32 %v254_v18, %v253_v16 }
 0x109   :  { %256 = vst [vmem:[%s384_s3] sm:$0x1] %v255_v19 }

// kernel: basic_block_forward.5
= control target key start
LH: loop header
LB: loop body
LE: loop exit
PB: predicated region body
PF: predicated region fallthrough
CT: control target
= control target key end

     0   :  { %vm91_vm0 = vcmask 293888   ;;  %vm116_vm1 = vcmask 1041408   ;;  %s615_s1 = inlined_call_operand.vmem [shape: bf16[36,128], index: 1, kind: input, shape index: {}]   ;;  %s616_s0 = inlined_call_operand.vmem [shape: bf16[128,36], index: 0, kind: input, shape index: {}]   ;;  %s617_s2 = inlined_call_operand.vmem [shape: bf16[128,128], index: 2, kind: output, shape index: {0}]   ;;  %s618_s3 = inlined_call_operand.vmem [shape: f32[1,1,128], index: 3, kind: output, shape index: {1}]   ;;  %s619_s4 = inlined_call_operand.vmem [shape: f32[1,1,128], index: 4, kind: output, shape index: {2}]  }
   0x1   :  { %v508_v0 = vld [vmem:[%s615_s1] sm:$0xff]   ;;  %v509_v1 = vld [vmem:[%s615_s1 + $0x8] sm:$0xff]   ;;  %v510_v2 = vld [vmem:[%s615_s1 + $0x10] ss:$0 sps:$4 sm:$0x33]  }
   0x2   :  { %478 = vmatprep.subr.bf16.mxu0 %v508_v0  ;;  %v511_v3 = vld [vmem:[%s616_s0] sm:$0xff]   ;;  %500 = vmatprep.subr.bf16.mxu1 %v508_v0  ;;  %v118_v5 = vsel %vm116_vm1, %v510_v2, 0  ;;  %v512_v6 = vld [vmem:[%s616_s0 + $0x8] sm:$0xff]   ;;  %v513_v8 = vld [vmem:[%s616_s0 + $0x10] sm:$0xff]  }
   0x3   :  { %479 = vmatpush3.bf16.msra.mxu0 %v508_v0  ;;  %503 = vmatpush3.bf16.msra.mxu1 %v508_v0  ;;  %v515_v4 = vld [vmem:[%s616_s0 + $0x20] sm:$0xff]   ;;  %v516_v7 = vld [vmem:[%s616_s0 + $0x28] sm:$0xff]   ;;  %v517_v9 = vld [vmem:[%s616_s0 + $0x30] sm:$0xff]  }
   0x4   :  { %480 = vmatprep.subr.bf16.mxu0 %v509_v1  ;;  %484 = vmatprep.mubr.msk.bf16.mxu0 %vm91_vm0, %v511_v3  ;;  %v514_v10 = vld [vmem:[%s616_s0 + $0x18] sm:$0xff]  }
   0x5   :  { %501 = vmatprep.subr.bf16.mxu1 %v509_v1  ;;  %492 = vmatprep.mubr.msk.bf16.mxu1 %vm91_vm0, %v515_v4  ;;  %v518_v11 = vld [vmem:[%s616_s0 + $0x38] sm:$0xff]  }
   0x7   :  { %481 = vmatpush3.bf16.msra.mxu0 %v509_v1  ;;  %504 = vmatpush3.bf16.msra.mxu1 %v509_v1 }
   0x8   :  { %506 = vmatprep.subr.msk.bf16.mxu0 %vm116_vm1, %v510_v2  ;;  %507 = vmatprep.subr.msk.bf16.mxu1 %vm116_vm1, %v510_v2 }
   0xb   :  { %483 = vmatpush3.bf16.msra.mxu0 %v118_v5  ;;  %505 = vmatpush3.bf16.msra.mxu1 %v118_v5 }
   0xe   :  { %485 = vmatmul.mubr.msk.bf16.vlgmr.msra.gmra.mrb[0].mxu0 %vm91_vm0, %v512_v6  ;;  %493 = vmatmul.mubr.msk.bf16.vlgmr.msra.gmra.mrb[0].mxu1 %vm91_vm0, %v516_v7 }
   0xf   :  { %488 = vmatprep.mubr.msk.bf16.mxu0 %vm91_vm0, %v513_v8  ;;  %496 = vmatprep.mubr.msk.bf16.mxu1 %vm91_vm0, %v517_v9 }
  0x16   :  { %489 = vmatmul.mubr.msk.bf16.gmra.mrb[4].mxu0 %vm91_vm0, %v514_v10  ;;  %497 = vmatmul.mubr.msk.bf16.gmra.mrb[4].mxu1 %vm91_vm0, %v518_v11 }
  0xe1   :  { %v486_v12 = vpop.f32.mrb[0].mxu0  ;;  %v494_v13 = vpop.f32.mrb[0].mxu1 }
  0xe2   :  { %v154_v14 = vpop.f32.mrb[1].mxu0  ;;  %v186_v15 = vpop.f32.mrb[1].mxu1  ;;  %v321_v27 = vmul.f32 %v486_v12, %v486_v12  ;;  %v329_v63 = vmul.f32 %v494_v13, %v494_v13 }
  0xe3   :  { %v487_v16 = vpop.f32.mrb[2].mxu0  ;;  %v495_v17 = vpop.f32.mrb[2].mxu1  ;;  %v319_v18 = vmul.f32 %v154_v14, %v154_v14  ;;  %v327_v57 = vmul.f32 %v186_v15, %v186_v15 }
  0xe4   :  { %v428_v19 = vpack.c.bf16 %v487_v16, %v486_v12  ;;  %v157_v20 = vpop.f32.mrb[3].mxu0  ;;  %v448_v21 = vpack.c.bf16 %v495_v17, %v494_v13  ;;  %v189_v22 = vpop.f32.mrb[3].mxu1  ;;  %v322_v30 = vmul.f32 %v487_v16, %v487_v16  ;;  %v330_v2 = vmul.f32 %v495_v17, %v495_v17 }
  0xe5   :  { %v423_v23 = vpack.c.bf16 %v157_v20, %v154_v14  ;;  %v297_v24 = vadd.f32 %v157_v20, %v154_v14  ;;  %v320_v25 = vmul.f32 %v157_v20, %v157_v20  ;;  %v443_v26 = vpack.c.bf16 %v189_v22, %v186_v15 }
  0xe6   :  { %460 = vst [vmem:[%s617_s2 + $0x8] sm:$0xff] %v428_v19   ;;  %464 = vst [vmem:[%s617_s2 + $0x28] sm:$0xff] %v448_v21   ;;  %v328_v62 = vmul.f32 %v189_v22, %v189_v22 }
  0xe7   :  { %424 = vst [vmem:[%s617_s2] sm:$0xff] %v423_v23   ;;  %v298_v28 = vadd.f32 %v486_v12, %v297_v24  ;;  %v335_v29 = vadd.f32 %v320_v25, %v319_v18  ;;  %463 = vst [vmem:[%s617_s2 + $0x20] sm:$0xff] %v443_v26  }
  0xe9   :  { %v336_v31 = vadd.f32 %v335_v29, %v321_v27  ;;  %v490_v32 = vpop.f32.mrb[4].mxu0  ;;  %v299_v33 = vadd.f32 %v487_v16, %v298_v28  ;;  %v498_v34 = vpop.f32.mrb[4].mxu1 }
  0xea   :  { %v170_v35 = vpop.f32.mrb[5].mxu0  ;;  %v202_v36 = vpop.f32.mrb[5].mxu1  ;;  %v325_v51 = vmul.f32 %v490_v32, %v490_v32  ;;  %v333_v11 = vmul.f32 %v498_v34, %v498_v34 }
  0xeb   :  { %v300_v37 = vadd.f32 %v299_v33, %v170_v35  ;;  %v323_v38 = vmul.f32 %v170_v35, %v170_v35  ;;  %v337_v39 = vadd.f32 %v336_v31, %v322_v30  ;;  %v491_v40 = vpop.f32.mrb[6].mxu0  ;;  %v499_v41 = vpop.f32.mrb[6].mxu1  ;;  %v331_v5 = vmul.f32 %v202_v36, %v202_v36 }
  0xec   :  { %v438_v42 = vpack.c.bf16 %v491_v40, %v490_v32  ;;  %v173_v43 = vpop.f32.mrb[7].mxu0  ;;  %v458_v44 = vpack.c.bf16 %v499_v41, %v498_v34  ;;  %v205_v45 = vpop.f32.mrb[7].mxu1  ;;  %v326_v54 = vmul.f32 %v491_v40, %v491_v40 }
  0xed   :  { %v338_v46 = vadd.f32 %v337_v39, %v323_v38  ;;  %v433_v47 = vpack.c.bf16 %v173_v43, %v170_v35  ;;  %v301_v48 = vadd.f32 %v300_v37, %v173_v43  ;;  %v324_v49 = vmul.f32 %v173_v43, %v173_v43 }
  0xee   :  { %462 = vst [vmem:[%s617_s2 + $0x18] sm:$0xff] %v438_v42   ;;  %466 = vst [vmem:[%s617_s2 + $0x38] sm:$0xff] %v458_v44   ;;  %v453_v50 = vpack.c.bf16 %v205_v45, %v202_v36  ;;  %v332_v10 = vmul.f32 %v205_v45, %v205_v45 }
  0xef   :  { %461 = vst [vmem:[%s617_s2 + $0x10] sm:$0xff] %v433_v47   ;;  %v302_v52 = vadd.f32 %v490_v32, %v301_v48  ;;  %v339_v53 = vadd.f32 %v338_v46, %v324_v49 }
  0xf0   :  { %465 = vst [vmem:[%s617_s2 + $0x30] sm:$0xff] %v453_v50  }
  0xf1   :  { %v340_v55 = vadd.f32 %v339_v53, %v325_v51  ;;  %v303_v56 = vadd.f32 %v491_v40, %v302_v52 }
  0xf3   :  { %v304_v58 = vadd.f32 %v303_v56, %v186_v15  ;;  %v341_v59 = vadd.f32 %v340_v55, %v326_v54  ;;  %v334_v15 = vmul.f32 %v499_v41, %v499_v41 }
  0xf5   :  { %v342_v60 = vadd.f32 %v341_v59, %v327_v57  ;;  %v305_v61 = vadd.f32 %v304_v58, %v189_v22 }
  0xf7   :  { %v306_v0 = vadd.f32 %v494_v13, %v305_v61  ;;  %v343_v1 = vadd.f32 %v342_v60, %v328_v62 }
  0xf9   :  { %v344_v3 = vadd.f32 %v343_v1, %v329_v63  ;;  %v307_v4 = vadd.f32 %v495_v17, %v306_v0 }
  0xfb   :  { %v308_v6 = vadd.f32 %v307_v4, %v202_v36  ;;  %v345_v7 = vadd.f32 %v344_v3, %v330_v2 }
  0xfd   :  { %v346_v8 = vadd.f32 %v345_v7, %v331_v5  ;;  %v309_v9 = vadd.f32 %v308_v6, %v205_v45 }
  0xff   :  { %v310_v12 = vadd.f32 %v498_v34, %v309_v9  ;;  %v347_v14 = vadd.f32 %v346_v8, %v332_v10 }
 0x101   :  { %v311_v16 = vadd.f32 %v499_v41, %v310_v12  ;;  %v348_v18 = vadd.f32 %v347_v14, %v333_v11 }
 0x103   :  { %v312_v19 = vrot.slane %v311_v16, 4  ;;  %v349_v20 = vadd.f32 %v348_v18, %v334_v15 }
 0x105   :  { %v313_v21 = vadd.f32 %v312_v19, %v311_v16  ;;  %v350_v13 = vrot.slane %v349_v20, 4 }
 0x107   :  { %v314_v22 = vrot.slane %v313_v21, 2  ;;  %v351_v23 = vadd.f32 %v350_v13, %v349_v20 }
 0x109   :  { %v315_v24 = vadd.f32 %v314_v22, %v313_v21  ;;  %v352_v17 = vrot.slane %v351_v23, 2 }
 0x10b   :  { %v316_v25 = vrot.slane %v315_v24, 1  ;;  %v353_v26 = vadd.f32 %v352_v17, %v351_v23 }
 0x10d   :  { %v317_v27 = vadd.f32 %v316_v25, %v315_v24  ;;  %v354_v28 = vrot.slane %v353_v26, 1 }
 0x10f   :  { %318 = vst [vmem:[%s618_s3] sm:$0x1] %v317_v27  ;;  %v355_v29 = vadd.f32 %v354_v28, %v353_v26 }
 0x111   :  { %356 = vst [vmem:[%s619_s4] sm:$0x1] %v355_v29 }

// kernel: basic_block_forward.6
= control target key start
LH: loop header
LB: loop body
LE: loop exit
PB: predicated region body
PF: predicated region fallthrough
CT: control target
= control target key end

     0   :  { %s422_s0 = inlined_call_operand.vmem [shape: bf16[128,128], index: 0, kind: input, shape index: {}]   ;;  %s423_s1 = inlined_call_operand.vmem [shape: f32[1,128], index: 1, kind: input, shape index: {}]   ;;  %s424_s2 = inlined_call_operand.vmem [shape: f32[1,128], index: 2, kind: input, shape index: {}]   ;;  %s425_s3 = inlined_call_operand.vmem [shape: bf16[128,128], index: 3, kind: output, shape index: {}]  }
   0x1   :  { %v227_v0 = vld [vmem:[%s422_s0] sm:$0xff]   ;;  %v298_v4 = vld [vmem:[%s422_s0 + $0x8] sm:$0xff]   ;;  %v299_v5 = vld [vmem:[%s422_s0 + $0x10] sm:$0xff]  }
   0x2   :  { %v338_v1 = vld [vmem:[%s423_s1] ss:$0 sm:$0xff]  ;;  %v228_v2 = vunpack.c.l.bf16 %v227_v0  ;;  %v229_v3 = vunpack.c.h.bf16 %v227_v0  ;;  %v300_v6 = vld [vmem:[%s422_s0 + $0x18] sm:$0xff]   ;;  %v232_v8 = vunpack.c.l.bf16 %v298_v4  ;;  %v233_v9 = vunpack.c.h.bf16 %v298_v4  ;;  %v302_v33 = vld [vmem:[%s422_s0 + $0x28] sm:$0xff]  }
   0x3   :  { %v352_v7 = vld [vmem:[%s424_s2] ss:$0 sm:$0xff]  ;;  %v236_v10 = vunpack.c.l.bf16 %v299_v5  ;;  %v237_v11 = vunpack.c.h.bf16 %v299_v5  ;;  %v240_v14 = vunpack.c.l.bf16 %v300_v6  ;;  %v241_v15 = vunpack.c.h.bf16 %v300_v6  ;;  %v303_v38 = vld [vmem:[%s422_s0 + $0x30] sm:$0xff]   ;;  %v304_v43 = vld [vmem:[%s422_s0 + $0x38] sm:$0xff]  }
   0x4   :  { %v53_v12 = vmul.f32 %v228_v2, %v338_v1  ;;  %v54_v13 = vmul.f32 %v229_v3, %v338_v1  ;;  %v55_v16 = vmul.f32 %v232_v8, %v338_v1  ;;  %v56_v17 = vmul.f32 %v233_v9, %v338_v1  ;;  %v301_v28 = vld [vmem:[%s422_s0 + $0x20] sm:$0xff]  }
   0x5   :  { %v57_v18 = vmul.f32 %v236_v10, %v338_v1  ;;  %v58_v19 = vmul.f32 %v237_v11, %v338_v1  ;;  %v59_v22 = vmul.f32 %v240_v14, %v338_v1  ;;  %v60_v23 = vmul.f32 %v241_v15, %v338_v1 }
   0x6   :  { %v76_v20 = vadd.f32 %v352_v7, %v53_v12  ;;  %v77_v21 = vadd.f32 %v352_v7, %v54_v13  ;;  %v78_v24 = vadd.f32 %v352_v7, %v55_v16  ;;  %v79_v25 = vadd.f32 %v352_v7, %v56_v17 }
   0x7   :  { %v80_v26 = vadd.f32 %v352_v7, %v57_v18  ;;  %v81_v27 = vadd.f32 %v352_v7, %v58_v19  ;;  %v82_v31 = vadd.f32 %v352_v7, %v59_v22  ;;  %v83_v32 = vadd.f32 %v352_v7, %v60_v23 }
   0x8   :  { %v92_v29 = vmax.f32 %v76_v20, 0.0  ;;  %v93_v30 = vmax.f32 %v77_v21, 0.0  ;;  %v94_v34 = vmax.f32 %v78_v24, 0.0  ;;  %v95_v35 = vmax.f32 %v79_v25, 0.0 }
   0x9   :  { %v96_v36 = vmax.f32 %v80_v26, 0.0  ;;  %v97_v37 = vmax.f32 %v81_v27, 0.0  ;;  %v98_v40 = vmax.f32 %v82_v31, 0.0  ;;  %v99_v41 = vmax.f32 %v83_v32, 0.0 }
   0xa   :  { %v261_v39 = vpack.c.bf16 %v93_v30, %v92_v29  ;;  %v244_v42 = vunpack.c.l.bf16 %v301_v28  ;;  %v266_v44 = vpack.c.bf16 %v95_v35, %v94_v34  ;;  %v245_v46 = vunpack.c.h.bf16 %v301_v28 }
   0xb   :  { %v271_v45 = vpack.c.bf16 %v97_v37, %v96_v36  ;;  %v248_v47 = vunpack.c.l.bf16 %v302_v33  ;;  %v276_v48 = vpack.c.bf16 %v99_v41, %v98_v40  ;;  %v249_v50 = vunpack.c.h.bf16 %v302_v33 }
   0xc   :  { %262 = vst [vmem:[%s425_s3] sm:$0xff] %v261_v39   ;;  %v61_v49 = vmul.f32 %v244_v42, %v338_v1  ;;  %v252_v51 = vunpack.c.l.bf16 %v303_v38  ;;  %305 = vst [vmem:[%s425_s3 + $0x8] sm:$0xff] %v266_v44   ;;  %v62_v52 = vmul.f32 %v245_v46, %v338_v1  ;;  %v253_v54 = vunpack.c.h.bf16 %v303_v38 }
   0xd   :  { %306 = vst [vmem:[%s425_s3 + $0x10] sm:$0xff] %v271_v45   ;;  %v63_v53 = vmul.f32 %v248_v47, %v338_v1  ;;  %v256_v55 = vunpack.c.l.bf16 %v304_v43  ;;  %307 = vst [vmem:[%s425_s3 + $0x18] sm:$0xff] %v276_v48   ;;  %v64_v57 = vmul.f32 %v249_v50, %v338_v1  ;;  %v257_v59 = vunpack.c.h.bf16 %v304_v43 }
   0xe   :  { %v84_v56 = vadd.f32 %v352_v7, %v61_v49  ;;  %v65_v58 = vmul.f32 %v252_v51, %v338_v1  ;;  %v85_v60 = vadd.f32 %v352_v7, %v62_v52  ;;  %v66_v62 = vmul.f32 %v253_v54, %v338_v1 }
   0xf   :  { %v86_v61 = vadd.f32 %v352_v7, %v63_v53  ;;  %v67_v63 = vmul.f32 %v256_v55, %v338_v1  ;;  %v87_v2 = vadd.f32 %v352_v7, %v64_v57  ;;  %v68_v4 = vmul.f32 %v257_v59, %v338_v1 }
  0x10   :  { %v100_v0 = vmax.f32 %v84_v56, 0.0  ;;  %v88_v3 = vadd.f32 %v352_v7, %v65_v58  ;;  %v101_v5 = vmax.f32 %v85_v60, 0.0  ;;  %v89_v8 = vadd.f32 %v352_v7, %v66_v62 }
  0x11   :  { %v102_v6 = vmax.f32 %v86_v61, 0.0  ;;  %v90_v9 = vadd.f32 %v352_v7, %v67_v63  ;;  %v103_v10 = vmax.f32 %v87_v2, 0.0  ;;  %v91_v12 = vadd.f32 %v352_v7, %v68_v4 }
  0x12   :  { %v104_v11 = vmax.f32 %v88_v3, 0.0  ;;  %v281_v13 = vpack.c.bf16 %v101_v5, %v100_v0  ;;  %v105_v14 = vmax.f32 %v89_v8, 0.0 }
  0x13   :  { %v106_v15 = vmax.f32 %v90_v9, 0.0  ;;  %v286_v16 = vpack.c.bf16 %v103_v10, %v102_v6  ;;  %v107_v17 = vmax.f32 %v91_v12, 0.0 }
  0x14   :  { %308 = vst [vmem:[%s425_s3 + $0x20] sm:$0xff] %v281_v13   ;;  %v291_v1 = vpack.c.bf16 %v105_v14, %v104_v11 }
  0x15   :  { %309 = vst [vmem:[%s425_s3 + $0x28] sm:$0xff] %v286_v16   ;;  %v296_v18 = vpack.c.bf16 %v107_v17, %v106_v15 }
  0x16   :  { %310 = vst [vmem:[%s425_s3 + $0x30] sm:$0xff] %v291_v1  }
  0x17   :  { %311 = vst [vmem:[%s425_s3 + $0x38] sm:$0xff] %v296_v18  }

// kernel: basic_block_forward.7
= control target key start
LH: loop header
LB: loop body
LE: loop exit
PB: predicated region body
PF: predicated region fallthrough
CT: control target
= control target key end

     0   :  { %vm107_vm0 = vcmask 588800   ;;  %vm132_vm1 = vcmask 1043456   ;;  %s651_s1 = inlined_call_operand.vmem [shape: bf16[72,128], index: 1, kind: input, shape index: {}]   ;;  %s652_s0 = inlined_call_operand.vmem [shape: bf16[128,72], index: 0, kind: input, shape index: {}]   ;;  %s653_s2 = inlined_call_operand.vmem [shape: bf16[128,128], index: 2, kind: output, shape index: {0}]   ;;  %s654_s3 = inlined_call_operand.vmem [shape: f32[1,1,128], index: 3, kind: output, shape index: {1}]   ;;  %s655_s4 = inlined_call_operand.vmem [shape: f32[1,1,128], index: 4, kind: output, shape index: {2}]  }
   0x1   :  { %v536_v0 = vld [vmem:[%s651_s1] sm:$0xff]   ;;  %v537_v1 = vld [vmem:[%s651_s1 + $0x8] sm:$0xff]   ;;  %v538_v2 = vld [vmem:[%s651_s1 + $0x10] sm:$0xff]  }
   0x2   :  { %498 = vmatprep.subr.bf16.mxu0 %v536_v0  ;;  %524 = vmatprep.subr.bf16.mxu1 %v536_v0  ;;  %v541_v3 = vld [vmem:[%s652_s0] sm:$0xff]   ;;  %v539_v4 = vld [vmem:[%s651_s1 + $0x18] sm:$0xff]   ;;  %v542_v8 = vld [vmem:[%s652_s0 + $0x8] sm:$0xff]  }
   0x3   :  { %499 = vmatpush3.bf16.msra.mxu0 %v536_v0  ;;  %529 = vmatpush3.bf16.msra.mxu1 %v536_v0  ;;  %v545_v5 = vld [vmem:[%s652_s0 + $0x20] sm:$0xff]   ;;  %v546_v9 = vld [vmem:[%s652_s0 + $0x28] sm:$0xff]   ;;  %v543_v10 = vld [vmem:[%s652_s0 + $0x10] sm:$0xff]  }
   0x4   :  { %500 = vmatprep.subr.bf16.mxu0 %v537_v1  ;;  %525 = vmatprep.subr.bf16.mxu1 %v537_v1  ;;  %v540_v6 = vld [vmem:[%s651_s1 + $0x20] ss:$0 sps:$4 sm:$0xff]   ;;  %v547_v11 = vld [vmem:[%s652_s0 + $0x30] sm:$0xff]   ;;  %v544_v12 = vld [vmem:[%s652_s0 + $0x18] sm:$0xff]  }
   0x5   :  { %508 = vmatprep.mubr.msk.bf16.mxu0 %vm107_vm0, %v541_v3  ;;  %516 = vmatprep.mubr.msk.bf16.mxu1 %vm107_vm0, %v545_v5  ;;  %v134_v7 = vsel %vm132_vm1, %v540_v6, 0  ;;  %v548_v13 = vld [vmem:[%s652_s0 + $0x38] sm:$0xff]  }
   0x7   :  { %501 = vmatpush3.bf16.msra.mxu0 %v537_v1  ;;  %530 = vmatpush3.bf16.msra.mxu1 %v537_v1 }
   0x8   :  { %502 = vmatprep.subr.bf16.mxu0 %v538_v2  ;;  %526 = vmatprep.subr.bf16.mxu1 %v538_v2 }
   0xb   :  { %503 = vmatpush3.bf16.msra.mxu0 %v538_v2  ;;  %531 = vmatpush3.bf16.msra.mxu1 %v538_v2 }
   0xc   :  { %504 = vmatprep.subr.bf16.mxu0 %v539_v4  ;;  %527 = vmatprep.subr.bf16.mxu1 %v539_v4 }
   0xf   :  { %505 = vmatpush3.bf16.msra.mxu0 %v539_v4  ;;  %532 = vmatpush3.bf16.msra.mxu1 %v539_v4 }
  0x10   :  { %534 = vmatprep.subr.msk.bf16.mxu0 %vm132_vm1, %v540_v6  ;;  %535 = vmatprep.subr.msk.bf16.mxu1 %vm132_vm1, %v540_v6 }
  0x13   :  { %507 = vmatpush3.bf16.msra.mxu0 %v134_v7  ;;  %533 = vmatpush3.bf16.msra.mxu1 %v134_v7 }
  0x16   :  { %509 = vmatmul.mubr.msk.bf16.vlgmr.msra.gmra.mrb[0].mxu0 %vm107_vm0, %v542_v8  ;;  %517 = vmatmul.mubr.msk.bf16.vlgmr.msra.gmra.mrb[0].mxu1 %vm107_vm0, %v546_v9 }
  0x17   :  { %512 = vmatprep.mubr.msk.bf16.mxu0 %vm107_vm0, %v543_v10  ;;  %520 = vmatprep.mubr.msk.bf16.mxu1 %vm107_vm0, %v547_v11 }
  0x1e   :  { %513 = vmatmul.mubr.msk.bf16.gmra.mrb[4].mxu0 %vm107_vm0, %v544_v12  ;;  %521 = vmatmul.mubr.msk.bf16.gmra.mrb[4].mxu1 %vm107_vm0, %v548_v13 }
  0xe9   :  { %v510_v14 = vpop.f32.mrb[0].mxu0  ;;  %v518_v15 = vpop.f32.mrb[0].mxu1 }
  0xea   :  { %v170_v16 = vpop.f32.mrb[1].mxu0  ;;  %v202_v17 = vpop.f32.mrb[1].mxu1  ;;  %v337_v29 = vmul.f32 %v510_v14, %v510_v14  ;;  %v345_v1 = vmul.f32 %v518_v15, %v518_v15 }
  0xeb   :  { %v511_v18 = vpop.f32.mrb[2].mxu0  ;;  %v519_v19 = vpop.f32.mrb[2].mxu1  ;;  %v335_v20 = vmul.f32 %v170_v16, %v170_v16  ;;  %v343_v59 = vmul.f32 %v202_v17, %v202_v17 }
  0xec   :  { %v446_v21 = vpack.c.bf16 %v511_v18, %v510_v14  ;;  %v173_v22 = vpop.f32.mrb[3].mxu0  ;;  %v466_v23 = vpack.c.bf16 %v519_v19, %v518_v15  ;;  %v205_v24 = vpop.f32.mrb[3].mxu1  ;;  %v338_v32 = vmul.f32 %v511_v18, %v511_v18  ;;  %v346_v4 = vmul.f32 %v519_v19, %v519_v19 }
  0xed   :  { %v441_v25 = vpack.c.bf16 %v173_v22, %v170_v16  ;;  %v313_v26 = vadd.f32 %v173_v22, %v170_v16  ;;  %v336_v27 = vmul.f32 %v173_v22, %v173_v22  ;;  %v461_v28 = vpack.c.bf16 %v205_v24, %v202_v17 }
  0xee   :  { %478 = vst [vmem:[%s653_s2 + $0x8] sm:$0xff] %v446_v21   ;;  %482 = vst [vmem:[%s653_s2 + $0x28] sm:$0xff] %v466_v23   ;;  %v344_v0 = vmul.f32 %v205_v24, %v205_v24 }
  0xef   :  { %442 = vst [vmem:[%s653_s2] sm:$0xff] %v441_v25   ;;  %v314_v30 = vadd.f32 %v510_v14, %v313_v26  ;;  %v351_v31 = vadd.f32 %v336_v27, %v335_v20  ;;  %481 = vst [vmem:[%s653_s2 + $0x20] sm:$0xff] %v461_v28  }
  0xf1   :  { %v352_v33 = vadd.f32 %v351_v31, %v337_v29  ;;  %v514_v34 = vpop.f32.mrb[4].mxu0  ;;  %v315_v35 = vadd.f32 %v511_v18, %v314_v30  ;;  %v522_v36 = vpop.f32.mrb[4].mxu1 }
  0xf2   :  { %v186_v37 = vpop.f32.mrb[5].mxu0  ;;  %v218_v38 = vpop.f32.mrb[5].mxu1  ;;  %v341_v53 = vmul.f32 %v514_v34, %v514_v34  ;;  %v349_v13 = vmul.f32 %v522_v36, %v522_v36 }
  0xf3   :  { %v316_v39 = vadd.f32 %v315_v35, %v186_v37  ;;  %v339_v40 = vmul.f32 %v186_v37, %v186_v37  ;;  %v353_v41 = vadd.f32 %v352_v33, %v338_v32  ;;  %v515_v42 = vpop.f32.mrb[6].mxu0  ;;  %v523_v43 = vpop.f32.mrb[6].mxu1  ;;  %v347_v7 = vmul.f32 %v218_v38, %v218_v38 }
  0xf4   :  { %v456_v44 = vpack.c.bf16 %v515_v42, %v514_v34  ;;  %v189_v45 = vpop.f32.mrb[7].mxu0  ;;  %v476_v46 = vpack.c.bf16 %v523_v43, %v522_v36  ;;  %v221_v47 = vpop.f32.mrb[7].mxu1  ;;  %v342_v56 = vmul.f32 %v515_v42, %v515_v42 }
  0xf5   :  { %v354_v48 = vadd.f32 %v353_v41, %v339_v40  ;;  %v451_v49 = vpack.c.bf16 %v189_v45, %v186_v37  ;;  %v317_v50 = vadd.f32 %v316_v39, %v189_v45  ;;  %v340_v51 = vmul.f32 %v189_v45, %v189_v45 }
  0xf6   :  { %480 = vst [vmem:[%s653_s2 + $0x18] sm:$0xff] %v456_v44   ;;  %484 = vst [vmem:[%s653_s2 + $0x38] sm:$0xff] %v476_v46   ;;  %v471_v52 = vpack.c.bf16 %v221_v47, %v218_v38  ;;  %v348_v12 = vmul.f32 %v221_v47, %v221_v47 }
  0xf7   :  { %479 = vst [vmem:[%s653_s2 + $0x10] sm:$0xff] %v451_v49   ;;  %v318_v54 = vadd.f32 %v514_v34, %v317_v50  ;;  %v355_v55 = vadd.f32 %v354_v48, %v340_v51 }
  0xf8   :  { %483 = vst [vmem:[%s653_s2 + $0x30] sm:$0xff] %v471_v52  }
  0xf9   :  { %v356_v57 = vadd.f32 %v355_v55, %v341_v53  ;;  %v319_v58 = vadd.f32 %v515_v42, %v318_v54 }
  0xfb   :  { %v320_v60 = vadd.f32 %v319_v58, %v202_v17  ;;  %v357_v61 = vadd.f32 %v356_v57, %v342_v56  ;;  %v350_v17 = vmul.f32 %v523_v43, %v523_v43 }
  0xfd   :  { %v358_v62 = vadd.f32 %v357_v61, %v343_v59  ;;  %v321_v63 = vadd.f32 %v320_v60, %v205_v24 }
  0xff   :  { %v322_v2 = vadd.f32 %v518_v15, %v321_v63  ;;  %v359_v3 = vadd.f32 %v358_v62, %v344_v0 }
 0x101   :  { %v360_v5 = vadd.f32 %v359_v3, %v345_v1  ;;  %v323_v6 = vadd.f32 %v519_v19, %v322_v2 }
 0x103   :  { %v324_v8 = vadd.f32 %v323_v6, %v218_v38  ;;  %v361_v9 = vadd.f32 %v360_v5, %v346_v4 }
 0x105   :  { %v362_v10 = vadd.f32 %v361_v9, %v347_v7  ;;  %v325_v11 = vadd.f32 %v324_v8, %v221_v47 }
 0x107   :  { %v326_v14 = vadd.f32 %v522_v36, %v325_v11  ;;  %v363_v16 = vadd.f32 %v362_v10, %v348_v12 }
 0x109   :  { %v327_v18 = vadd.f32 %v523_v43, %v326_v14  ;;  %v364_v20 = vadd.f32 %v363_v16, %v349_v13 }
 0x10b   :  { %v328_v21 = vrot.slane %v327_v18, 4  ;;  %v365_v22 = vadd.f32 %v364_v20, %v350_v17 }
 0x10d   :  { %v329_v23 = vadd.f32 %v328_v21, %v327_v18  ;;  %v366_v15 = vrot.slane %v365_v22, 4 }
 0x10f   :  { %v330_v24 = vrot.slane %v329_v23, 2  ;;  %v367_v25 = vadd.f32 %v366_v15, %v365_v22 }
 0x111   :  { %v331_v26 = vadd.f32 %v330_v24, %v329_v23  ;;  %v368_v19 = vrot.slane %v367_v25, 2 }
 0x113   :  { %v332_v27 = vrot.slane %v331_v26, 1  ;;  %v369_v28 = vadd.f32 %v368_v19, %v367_v25 }
 0x115   :  { %v333_v29 = vadd.f32 %v332_v27, %v331_v26  ;;  %v370_v30 = vrot.slane %v369_v28, 1 }
 0x117   :  { %334 = vst [vmem:[%s654_s3] sm:$0x1] %v333_v29  ;;  %v371_v31 = vadd.f32 %v370_v30, %v369_v28 }
 0x119   :  { %372 = vst [vmem:[%s655_s4] sm:$0x1] %v371_v31 }

// kernel: basic_block_forward.9
= control target key start
LH: loop header
LB: loop body
LE: loop exit
PB: predicated region body
PF: predicated region fallthrough
CT: control target
= control target key end

     0   :  { %vm188_vm0 = vcmask 1041408   ;;  %vm163_vm1 = vcmask 31744   ;;  %s707_s0 = inlined_call_operand.vmem [shape: bf16[128,128], index: 0, kind: input, shape index: {}]   ;;  %s708_s1 = inlined_call_operand.vmem [shape: f32[1,128], index: 1, kind: input, shape index: {}]   ;;  %s709_s2 = inlined_call_operand.vmem [shape: f32[1,128], index: 2, kind: input, shape index: {}]   ;;  %s710_s3 = inlined_call_operand.vmem [shape: bf16[128,4], index: 3, kind: input, shape index: {}]   ;;  %s711_s4 = inlined_call_operand.vmem [shape: bf16[4,128], index: 4, kind: input, shape index: {}]   ;;  %s712_s5 = inlined_call_operand.vmem [shape: f32[1,128], index: 5, kind: input, shape index: {}]   ;;  %s713_s6 = inlined_call_operand.vmem [shape: f32[1,128], index: 6, kind: input, shape index: {}]   ;;  %s714_s7 = inlined_call_operand.hbm [shape: f32[128,128], index: 7, kind: output, shape index: {}]  }
   0x1   :  { %v122_v0 = vld [vmem:[%s711_s4] sm:$0x3]  ;;  %v494_v4 = vld [vmem:[%s710_s3 + $0x8] sm:$0xff]   ;;  %v496_v6 = vld [vmem:[%s710_s3 + $0x10] sm:$0xff]  }
   0x2   :  { %v492_v1 = vld [vmem:[%s710_s3] sm:$0xff]   ;;  %487 = vmatprep.subr.msk.bf16.mxu0 %vm188_vm0, %v122_v0  ;;  %488 = vmatprep.subr.msk.bf16.mxu1 %vm188_vm0, %v122_v0  ;;  %v190_v2 = vsel %vm188_vm0, %v122_v0, 0  ;;  %v495_v5 = vld [vmem:[%s710_s3 + $0x28] sm:$0xff]   ;;  %v497_v7 = vld [vmem:[%s710_s3 + $0x30] sm:$0xff]  }
   0x3   :  { %468 = vmatpush3.bf16.msra.mxu0 %v190_v2  ;;  %486 = vmatpush3.bf16.msra.mxu1 %v190_v2  ;;  %v493_v3 = vld [vmem:[%s710_s3 + $0x20] sm:$0xff]   ;;  %v498_v8 = vld [vmem:[%s710_s3 + $0x18] sm:$0xff]  }
   0x4   :  { %469 = vmatprep.mubr.msk.bf16.mxu0 %vm163_vm1, %v492_v1  ;;  %477 = vmatprep.mubr.msk.bf16.mxu1 %vm163_vm1, %v493_v3 }
   0x6   :  { %470 = vmatmul.mubr.msk.bf16.vlgmr.msra.gmra.mrb[0].mxu0 %vm163_vm1, %v494_v4  ;;  %478 = vmatmul.mubr.msk.bf16.vlgmr.msra.gmra.mrb[0].mxu1 %vm163_vm1, %v495_v5 }
   0x7   :  { %473 = vmatprep.mubr.msk.bf16.mxu0 %vm163_vm1, %v496_v6  ;;  %481 = vmatprep.mubr.msk.bf16.mxu1 %vm163_vm1, %v497_v7 }
   0x8   :  { %12 = vsyncpa [#allocation3], 0  ;;  %v499_v9 = vld [vmem:[%s710_s3 + $0x38] sm:$0xff]   ;;  %v451_v10 = vld [vmem:[%s707_s0 + $0x8] sm:$0xff]  }
   0x9   :  { %v455_v11 = vld [vmem:[%s707_s0 + $0x28] sm:$0xff]   ;;  %v420_v12 = vld [vmem:[%s707_s0] sm:$0xff]   ;;  %v425_v14 = vunpack.c.l.bf16 %v451_v10  ;;  %v453_v15 = vld [vmem:[%s707_s0 + $0x18] sm:$0xff]   ;;  %v426_v23 = vunpack.c.h.bf16 %v451_v10 }
   0xa   :  { %v454_v13 = vld [vmem:[%s707_s0 + $0x20] sm:$0xff]   ;;  %v457_v16 = vld [vmem:[%s707_s0 + $0x38] sm:$0xff]   ;;  %v441_v18 = vunpack.c.l.bf16 %v455_v11  ;;  %v421_v19 = vunpack.c.l.bf16 %v420_v12  ;;  %v452_v20 = vld [vmem:[%s707_s0 + $0x10] sm:$0xff]   ;;  %v442_v24 = vunpack.c.h.bf16 %v455_v11  ;;  %v422_v25 = vunpack.c.h.bf16 %v420_v12 }
   0xb   :  { %v399_v17 = vld [vmem:[%s708_s1] ss:$0 sm:$0xff]  ;;  %v456_v21 = vld [vmem:[%s707_s0 + $0x30] sm:$0xff]   ;;  %v437_v22 = vunpack.c.l.bf16 %v454_v13  ;;  %v438_v26 = vunpack.c.h.bf16 %v454_v13  ;;  %v433_v27 = vunpack.c.l.bf16 %v453_v15  ;;  %v449_v28 = vunpack.c.l.bf16 %v457_v16 }
   0xc   :  { %v69_v29 = vmul.f32 %v425_v14, %v399_v17  ;;  %v429_v30 = vunpack.c.l.bf16 %v452_v20  ;;  %v445_v31 = vunpack.c.l.bf16 %v456_v21  ;;  %v434_v32 = vunpack.c.h.bf16 %v453_v15  ;;  %v400_v33 = vld [vmem:[%s709_s2] ss:$0 sm:$0xff] }
   0xd   :  { %v77_v34 = vmul.f32 %v441_v18, %v399_v17  ;;  %v67_v35 = vmul.f32 %v421_v19, %v399_v17  ;;  %v450_v36 = vunpack.c.h.bf16 %v457_v16  ;;  %v430_v37 = vunpack.c.h.bf16 %v452_v20  ;;  %v635_v50 = vld [vmem:[%s712_s5] ss:$0 sm:$0xff] }
   0xe   :  { %474 = vmatmul.mubr.msk.bf16.gmra.mrb[4].mxu0 %vm163_vm1, %v498_v8  ;;  %482 = vmatmul.mubr.msk.bf16.gmra.mrb[4].mxu1 %vm163_vm1, %v499_v9  ;;  %v75_v38 = vmul.f32 %v437_v22, %v399_v17  ;;  %v70_v39 = vmul.f32 %v426_v23, %v399_v17  ;;  %v78_v40 = vmul.f32 %v442_v24, %v399_v17  ;;  %v446_v41 = vunpack.c.h.bf16 %v456_v21  ;;  %v649_v6 = vld [vmem:[%s713_s6] ss:$0 sm:$0xff]  ;;  %s524_s6 = smov [#allocation2]  }
   0xf   :  { %v68_v42 = vmul.f32 %v422_v25, %v399_v17  ;;  %v76_v43 = vmul.f32 %v438_v26, %v399_v17  ;;  %v73_v44 = vmul.f32 %v433_v27, %v399_v17  ;;  %v81_v45 = vmul.f32 %v449_v28, %v399_v17  ;;  %s388_s13 = sshll.u32 %s524_s6, 4  ;;  %s389_s13 = int_to_ptr.vmem [resolvable:$true] %s388_s13 }
  0x10   :  { %v92_v46 = vadd.f32 %v400_v33, %v69_v29  ;;  %v71_v47 = vmul.f32 %v429_v30, %v399_v17  ;;  %v79_v48 = vmul.f32 %v445_v31, %v399_v17  ;;  %v74_v49 = vmul.f32 %v434_v32, %v399_v17  ;;  %s500_s14 = scalar_lea.vmem %s389_s13, 2048  ;;  %p505_p1 = scmp.lt.s32.totalorder %s389_s13, %s389_s13 }
  0x11   :  { %v100_v51 = vadd.f32 %v400_v33, %v77_v34  ;;  %v90_v52 = vadd.f32 %v400_v33, %v67_v35  ;;  %v82_v53 = vmul.f32 %v450_v36, %v399_v17  ;;  %v72_v54 = vmul.f32 %v430_v37, %v399_v17  ;;  %p501_p0 = scmp.ne.s32.totalorder %s389_s13, %s500_s14  ;;  %p506_p2 = scmp.lt.s32.totalorder %s500_s14, %s500_s14 }
  0x12   :  { %v98_v55 = vadd.f32 %v400_v33, %v75_v38  ;;  %v93_v56 = vadd.f32 %v400_v33, %v70_v39  ;;  %v101_v57 = vadd.f32 %v400_v33, %v78_v40  ;;  %v80_v58 = vmul.f32 %v446_v41, %v399_v17 }
  0x13   :  { %v91_v60 = vadd.f32 %v400_v33, %v68_v42  ;;  %v99_v61 = vadd.f32 %v400_v33, %v76_v43  ;;  %v96_v62 = vadd.f32 %v400_v33, %v73_v44  ;;  %v637_v63 = vadd.f32 %v400_v33, %v81_v45  ;;  %p507_p3 = por %p506_p2, %p505_p1 }
  0x14   :  { %v640_v3 = vadd.f32 %v400_v33, %v71_v47  ;;  %v642_v4 = vadd.f32 %v400_v33, %v79_v48  ;;  %v644_v5 = vadd.f32 %v400_v33, %v74_v49  ;;  %v653_v11 = vadd.f32 %v400_v33, %v82_v53 }
  0x15   :  { %v655_v12 = vadd.f32 %v400_v33, %v72_v54  ;;  %v659_v18 = vadd.f32 %v400_v33, %v80_v58  ;;  %p508_p4 = pnand %p507_p3, %p501_p0 }
  0xd9   :  { %v471_v59 = vpop.f32.mrb[0].mxu0  ;;  %v479_v1 = vpop.f32.mrb[0].mxu1 }
  0xda   :  { %v298_v0 = vmul.f32 %v471_v59, %v635_v50  ;;  %v226_v2 = vpop.f32.mrb[1].mxu0  ;;  %v306_v7 = vmul.f32 %v479_v1, %v635_v50  ;;  %v258_v9 = vpop.f32.mrb[1].mxu1 }
  0xdb   :  { %v296_v8 = vmul.f32 %v635_v50, %v226_v2  ;;  %v472_v10 = vpop.f32.mrb[2].mxu0  ;;  %v304_v14 = vmul.f32 %v635_v50, %v258_v9  ;;  %v480_v16 = vpop.f32.mrb[2].mxu1 }
  0xdc   :  { %v314_v13 = vadd.f32 %v298_v0, %v92_v46  ;;  %v299_v15 = vmul.f32 %v472_v10, %v635_v50  ;;  %v229_v17 = vpop.f32.mrb[3].mxu0  ;;  %v322_v19 = vadd.f32 %v306_v7, %v100_v51  ;;  %v307_v21 = vmul.f32 %v480_v16, %v635_v50  ;;  %v261_v23 = vpop.f32.mrb[3].mxu1 }
  0xdd   :  { %v312_v20 = vadd.f32 %v296_v8, %v90_v52  ;;  %v297_v22 = vmul.f32 %v635_v50, %v229_v17  ;;  %v320_v25 = vadd.f32 %v304_v14, %v98_v55  ;;  %v305_v27 = vmul.f32 %v635_v50, %v261_v23 }
  0xde   :  { %v337_v24 = vadd.f32 %v649_v6, %v314_v13  ;;  %v315_v26 = vadd.f32 %v299_v15, %v93_v56  ;;  %v345_v28 = vadd.f32 %v649_v6, %v322_v19  ;;  %v323_v30 = vadd.f32 %v307_v21, %v101_v57 }
  0xdf   :  { %v335_v29 = vadd.f32 %v649_v6, %v312_v20  ;;  %v313_v31 = vadd.f32 %v297_v22, %v91_v60  ;;  %v343_v33 = vadd.f32 %v649_v6, %v320_v25  ;;  %v321_v35 = vadd.f32 %v305_v27, %v99_v61 }
  0xe0   :  { %v353_v32 = vmax.f32 %v337_v24, 0.0  ;;  %v338_v34 = vadd.f32 %v649_v6, %v315_v26  ;;  %v361_v36 = vmax.f32 %v345_v28, 0.0  ;;  %v346_v38 = vadd.f32 %v649_v6, %v323_v30 }
  0xe1   :  { %v351_v37 = vmax.f32 %v335_v29, 0.0  ;;  %v336_v39 = vadd.f32 %v649_v6, %v313_v31  ;;  %v475_v40 = vpop.f32.mrb[4].mxu0  ;;  %v359_v41 = vmax.f32 %v343_v33, 0.0  ;;  %v344_v43 = vadd.f32 %v649_v6, %v321_v35  ;;  %v483_v45 = vpop.f32.mrb[4].mxu1 }
  0xe2   :  { %369 = vst [vmem:[#allocation2 + $0x10] sm:$0xff] %v353_v32  ;;  %v354_v42 = vmax.f32 %v338_v34, 0.0  ;;  %v302_v44 = vmul.f32 %v475_v40, %v635_v50  ;;  %v242_v46 = vpop.f32.mrb[5].mxu0  ;;  %377 = vst [vmem:[#allocation2 + $0x50] sm:$0xff] %v361_v36  ;;  %v362_v47 = vmax.f32 %v346_v38, 0.0  ;;  %v310_v49 = vmul.f32 %v483_v45, %v635_v50  ;;  %v274_v52 = vpop.f32.mrb[5].mxu1 }
  0xe3   :  { %367 = vst [vmem:[#allocation2] sm:$0xff] %v351_v37  ;;  %v352_v48 = vmax.f32 %v336_v39, 0.0  ;;  %v300_v51 = vmul.f32 %v635_v50, %v242_v46  ;;  %v476_v53 = vpop.f32.mrb[6].mxu0  ;;  %375 = vst [vmem:[#allocation2 + $0x40] sm:$0xff] %v359_v41  ;;  %v360_v54 = vmax.f32 %v344_v43, 0.0  ;;  %v308_v56 = vmul.f32 %v635_v50, %v274_v52  ;;  %v484_v58 = vpop.f32.mrb[6].mxu1 }
  0xe4   :  { %370 = vst [vmem:[#allocation2 + $0x18] sm:$0xff] %v354_v42  ;;  %v318_v55 = vadd.f32 %v302_v44, %v96_v62  ;;  %v303_v57 = vmul.f32 %v476_v53, %v635_v50  ;;  %v245_v59 = vpop.f32.mrb[7].mxu0  ;;  %378 = vst [vmem:[#allocation2 + $0x58] sm:$0xff] %v362_v47  ;;  %v326_v60 = vadd.f32 %v310_v49, %v637_v63  ;;  %v277_v2 = vpop.f32.mrb[7].mxu1 }
  0xe5   :  { %368 = vst [vmem:[#allocation2 + $0x8] sm:$0xff] %v352_v48  ;;  %v316_v61 = vadd.f32 %v300_v51, %v640_v3  ;;  %v311_v0 = vmul.f32 %v484_v58, %v635_v50  ;;  %v301_v1 = vmul.f32 %v635_v50, %v245_v59  ;;  %376 = vst [vmem:[#allocation2 + $0x48] sm:$0xff] %v360_v54 }
  0xe6   :  { %v341_v62 = vadd.f32 %v649_v6, %v318_v55  ;;  %v324_v7 = vadd.f32 %v308_v56, %v642_v4  ;;  %v319_v8 = vadd.f32 %v303_v57, %v644_v5  ;;  %v309_v9 = vmul.f32 %v635_v50, %v277_v2 }
  0xe7   :  { %v349_v10 = vadd.f32 %v649_v6, %v326_v60  ;;  %v339_v63 = vadd.f32 %v649_v6, %v316_v61  ;;  %v327_v3 = vadd.f32 %v311_v0, %v653_v11  ;;  %v317_v13 = vadd.f32 %v301_v1, %v655_v12 }
  0xe8   :  { %v357_v14 = vmax.f32 %v341_v62, 0.0  ;;  %v347_v15 = vadd.f32 %v649_v6, %v324_v7  ;;  %v342_v16 = vadd.f32 %v649_v6, %v319_v8  ;;  %v325_v17 = vadd.f32 %v309_v9, %v659_v18 }
  0xe9   :  { %v365_v4 = vmax.f32 %v349_v10, 0.0  ;;  %v355_v5 = vmax.f32 %v339_v63, 0.0  ;;  %v350_v50 = vadd.f32 %v649_v6, %v327_v3  ;;  %v340_v19 = vadd.f32 %v649_v6, %v317_v13 }
  0xea   :  { %373 = vst [vmem:[#allocation2 + $0x30] sm:$0xff] %v357_v14  ;;  %v363_v20 = vmax.f32 %v347_v15, 0.0  ;;  %v358_v11 = vmax.f32 %v342_v16, 0.0  ;;  %v348_v12 = vadd.f32 %v649_v6, %v325_v17 }
  0xeb   :  { %381 = vst [vmem:[#allocation2 + $0x70] sm:$0xff] %v365_v4  ;;  %371 = vst [vmem:[#allocation2 + $0x20] sm:$0xff] %v355_v5  ;;  %v366_v21 = vmax.f32 %v350_v50, 0.0  ;;  %v356_v22 = vmax.f32 %v340_v19, 0.0 }
  0xec   :  { %379 = vst [vmem:[#allocation2 + $0x60] sm:$0xff] %v363_v20  ;;  %374 = vst [vmem:[#allocation2 + $0x38] sm:$0xff] %v358_v11  ;;  %v364_v18 = vmax.f32 %v348_v12, 0.0 }
  0xed   :  { %382 = vst [vmem:[#allocation2 + $0x78] sm:$0xff] %v366_v21  ;;  %372 = vst [vmem:[#allocation2 + $0x28] sm:$0xff] %v356_v22 }
  0xee   :  { %380 = vst [vmem:[#allocation2 + $0x68] sm:$0xff] %v364_v18 }
  0xef   :  { %511 = shalt.err (!%p508_p4)
}
  0xf0   :  { %s512_s17 = scalar_lea.hbm %s714_s7, 2048 }
  0xf1   :  { %p513_p5 = scmp.ne.s32.totalorder %s714_s7, %s512_s17  ;;  %p516_p6 = scmp.lt.u32.totalorder %s512_s17, %s714_s7 }
  0xf3   :  { %p518_p7 = pnand %p516_p6, %p513_p5 }
  0xf5   :  { %521 = shalt.err (!%p518_p7)
}
  0xf6   :  { %s525_s22 = smov 128   ;;  %s526_s23 = smov 8  }
  0xf7   :  { %394 = dma.vmem_to_hbm [thread:$0]  %s389_s13, 2048, %s714_s7, [#allocation3], %s525_s22, %s525_s22, %s526_s23  }
  0xf8   :  { %522 = dma.done.wait [#allocation3], 2048  }
  0xf9   :  { %523 = vsyncadd [#allocation3], 4294965248 }
  0xfa   :  { %398 = vsyncpa [#allocation3], 1 }

</bundles_post_ra>
